<compile_context>
chip_gen: v7x
topology: tpu7x:2x2x1
jax: 0.10.0
libtpu: 0.0.40
codegen_flags: <defaults>
</compile_context>

<pallas_src>
import math
import functools

import jax
import jax.numpy as jnp
from jax.experimental import pallas as pl
from jax.experimental.pallas import tpu as pltpu


# ----------------------------- glue helpers ---------------------------------

def pos_encoding(t_len, d_model):
    """JAX port of PosEncoding(t_len, d_model) from the PyTorch script."""
    i = jnp.arange(d_model)
    pos = jnp.arange(t_len)
    POS, I = jnp.meshgrid(pos, i, indexing="ij")      # torch.meshgrid default is 'ij'
    PE = (1 - I % 2) * jnp.sin(POS / 10 ** (4 * I / d_model)) \
         + (I % 2) * jnp.cos(POS / 10 ** (4 * (I - 1) / d_model))
    return PE.astype(jnp.float32)


# ----------------------------- Pallas kernel --------------------------------

def tf_encoder_layer_kernel(x_ref, pe_ref,
                            wqkv_ref, bqkv_ref, wo_ref, bo_ref,
                            g1_ref, beta1_ref,
                            wff1_ref, bff1_ref, wff2_ref, bff2_ref,
                            g2_ref, beta2_ref,
                            out_ref, *, numhead):
    """One encoder layer per grid step; out_ref is the resident activation carry."""
    l = pl.program_id(1)                       # layer index (inner, "arbitrary" axis)
    bb, S, D = x_ref.shape
    H = numhead
    dh = D // H
    N = bb * S
    scale = 1.0 / math.sqrt(dh)

    # Layer 0: initialize the carry with embeddings + positional encoding
    # (dropout is identity in eval mode).
    @pl.when(l == 0)
    def _():
        out_ref[...] = x_ref[...] + pe_ref[...][None, :, :]

    x = out_ref[...].reshape(N, D)             # f32 carry from the previous layer
    xb = x.astype(jnp.bfloat16)

    # ---- fused QKV projection: one MXU pass, (N, D) @ (D, 3D) ----
    qkv = jnp.dot(xb, wqkv_ref[0], preferred_element_type=jnp.float32) + bqkv_ref[0]
    qkv = qkv.astype(jnp.bfloat16)

    # ---- multi-head self-attention ----
    # Heads via a small static loop; batch handled by single-batch 3-D einsums.
    # Each head's context is folded directly into the output projection
    # (wo stored as (H, dh, D)), so there is no lane-dim concat of head outputs.
    wo_l = wo_ref[0]                           # (H, dh, D) bf16
    attn = jnp.zeros((N, D), jnp.float32)
    for h in range(H):
        qh = qkv[:, h * dh:(h + 1) * dh].reshape(bb, S, dh)
        kh = qkv[:, D + h * dh:D + (h + 1) * dh].reshape(bb, S, dh)
        vh = qkv[:, 2 * D + h * dh:2 * D + (h + 1) * dh].reshape(bb, S, dh)
        s = jnp.einsum('bqd,bkd->bqk', qh, kh,
                       preferred_element_type=jnp.float32) * scale
        s = s - jnp.max(s, axis=-1, keepdims=True)
        e = jnp.exp(s)
        p = e * pl.reciprocal(jnp.sum(e, axis=-1, keepdims=True), approx=True)
        oh = jnp.einsum('bqk,bkd->bqd', p.astype(jnp.bfloat16), vh,
                        preferred_element_type=jnp.float32)
        attn = attn + jnp.dot(oh.reshape(N, dh).astype(jnp.bfloat16), wo_l[h],
                              preferred_element_type=jnp.float32)
    attn = attn + bo_ref[0]

    # ---- residual + LayerNorm 1 (f32, eps=1e-5, biased variance like torch) ----
    h1 = x + attn
    mu1 = jnp.mean(h1, axis=-1, keepdims=True)
    var1 = jnp.mean((h1 - mu1) ** 2, axis=-1, keepdims=True)
    h1n = (h1 - mu1) * jax.lax.rsqrt(var1 + 1e-5) * g1_ref[0] + beta1_ref[0]

    # ---- feed-forward: Linear -> ReLU -> Linear ----
    f = jnp.dot(h1n.astype(jnp.bfloat16), wff1_ref[0],
                preferred_element_type=jnp.float32) + bff1_ref[0]
    f = jnp.maximum(f, 0.0)
    f = jnp.dot(f.astype(jnp.bfloat16), wff2_ref[0],
                preferred_element_type=jnp.float32) + bff2_ref[0]

    # ---- residual + LayerNorm 2 ----
    h2 = h1n + f
    mu2 = jnp.mean(h2, axis=-1, keepdims=True)
    var2 = jnp.mean((h2 - mu2) ** 2, axis=-1, keepdims=True)
    y = (h2 - mu2) * jax.lax.rsqrt(var2 + 1e-5) * g2_ref[0] + beta2_ref[0]

    # Write the carry back; HBM writeback happens only when the batch block changes.
    out_ref[...] = y.reshape(bb, S, D).astype(out_ref.dtype)


# ----------------------------- wrapper ---------------------------------------

def tf_encoder_forward(tokens, embed_table, params, numlayer, numhead,
                       batch_block=1):
    """tokens: (B, S) int32 -> (B, S, D) float32."""
    B, S = tokens.shape
    D = embed_table.shape[1]
    F = params["wff1"].shape[-1]
    dh = D // numhead
    assert B % batch_block == 0

    # TODO(synk): embedding gather stays in plain JAX (no clean Pallas gather at this size).
    x = jnp.take(embed_table, tokens, axis=0)                  # (B, S, D) f32
    pe = pos_encoding(S, D)                                    # (S, D)    f32

    # Fused QKV weight/bias; wo reshaped to (L, H, dh, D); big weights in bf16.
    wqkv = jnp.concatenate([params["wq"], params["wk"], params["wv"]],
                           axis=-1).astype(jnp.bfloat16)        # (L, D, 3D)
    bqkv = jnp.concatenate([params["bq"], params["bk"], params["bv"]],
                           axis=-1)                             # (L, 1, 3D)
    wo = params["wo"].reshape(numlayer, numhead, dh, D).astype(jnp.bfloat16)
    wff1 = params["wff1"].astype(jnp.bfloat16)
    wff2 = params["wff2"].astype(jnp.bfloat16)

    weights = [wqkv, bqkv, wo, params["bo"], params["g1"], params["beta1"],
               wff1, params["bff1"], wff2, params["bff2"],
               params["g2"], params["beta2"]]

    def layer_spec(a):
        tail = tuple(a.shape[1:])
        return pl.BlockSpec((1,) + tail,
                            lambda b, l, _z=(0,) * len(tail): (l,) + _z)

    in_specs = ([pl.BlockSpec((batch_block, S, D), lambda b, l: (b, 0, 0)),
                 pl.BlockSpec((S, D), lambda b, l: (0, 0))]
                + [layer_spec(w) for w in weights])
    out_spec = pl.BlockSpec((batch_block, S, D), lambda b, l: (b, 0, 0))

    n_bblk = B // batch_block
    grid = (n_bblk, numlayer)          # (parallel batch axis, arbitrary layer axis)

    # Advisory cost estimate so XLA schedules the call vs. the gather glue well.
    tok = B * S
    flops = numlayer * (2 * tok * D * 3 * D            # fused QKV
                        + 4 * B * numhead * S * S * dh  # scores + PV
                        + 2 * tok * D * D               # output projection
                        + 4 * tok * D * F)              # FFN
    transcendentals = numlayer * (B * numhead * S * S + 4 * tok)
    w_bytes = sum(int(w.size) * w.dtype.itemsize for w in weights)
    bytes_accessed = int(x.size) * 4 * 2 + n_bblk * w_bytes + int(pe.size) * 4

    kernel = functools.partial(tf_encoder_layer_kernel, numhead=numhead)
    out = pl.pallas_call(
        kernel,
        out_shape=jax.ShapeDtypeStruct((B, S, D), jnp.float32),
        grid=grid,
        in_specs=in_specs,
        out_specs=out_spec,
        compiler_params=pltpu.CompilerParams(
            dimension_semantics=("parallel", "arbitrary"),
            vmem_limit_bytes=48 * 1024 * 1024),          # fits v7x's 64 MiB VMEM
        cost_estimate=pl.CostEstimate(flops=int(flops),
                                      transcendentals=int(transcendentals),
                                      bytes_accessed=int(bytes_accessed)),
    )(x, pe, *weights)
    return out


# ----------------------------- parameter init -------------------------------

def init_params(key, vocab_size, d_model, d_ff, numlayer):
    keys = jax.random.split(key, 7)
    s = 0.02
    L, D, F = numlayer, d_model, d_ff
    embed = s * jax.random.normal(keys[0], (vocab_size, D), jnp.float32)
    params = dict(
        wq=s * jax.random.normal(keys[1], (L, D, D), jnp.float32),
        bq=jnp.zeros((L, 1, D), jnp.float32),
        wk=s * jax.random.normal(keys[2], (L, D, D), jnp.float32),
        bk=jnp.zeros((L, 1, D), jnp.float32),
        wv=s * jax.random.normal(keys[3], (L, D, D), jnp.float32),
        bv=jnp.zeros((L, 1, D), jnp.float32),
        wo=s * jax.random.normal(keys[4], (L, D, D), jnp.float32),
        bo=jnp.zeros((L, 1, D), jnp.float32),
        g1=jnp.ones((L, 1, D), jnp.float32),
        beta1=jnp.zeros((L, 1, D), jnp.float32),
        wff1=s * jax.random.normal(keys[5], (L, D, F), jnp.float32),
        bff1=jnp.zeros((L, 1, F), jnp.float32),
        wff2=s * jax.random.normal(keys[6], (L, F, D), jnp.float32),
        bff2=jnp.zeros((L, 1, D), jnp.float32),
        g2=jnp.ones((L, 1, D), jnp.float32),
        beta2=jnp.zeros((L, 1, D), jnp.float32),
    )
    return embed, params


# --------------------------------- main --------------------------------------

if __name__ == "__main__":
    vocab_size = 50
    d_model = 32
    d_ff = 64
    numlayer = 2
    numhead = 4
    B, S = 2, 8

    key = jax.random.PRNGKey(0)
    k_tok, k_par = jax.random.split(key)
    tokens = jax.random.randint(k_tok, (B, S), 0, vocab_size, dtype=jnp.int32)
    embed_table, params = init_params(k_par, vocab_size, d_model, d_ff, numlayer)

    out = tf_encoder_forward(tokens, embed_table, params, numlayer, numhead,
                             batch_block=1)
    out = jax.block_until_ready(out)
    assert out.shape == (B, S, d_model)
    assert bool(jnp.all(jnp.isfinite(out)))
    print("KERNEL_OK")
</pallas_src>

<mosaic_0001>
module attributes {stable_mosaic.version = 11 : i64} {
  func.func @tf_encoder_layer_kernel(%arg0: i32, %arg1: i32, %arg2: memref<1x8x32xf32, #tpu.memory_space<vmem>>, %arg3: memref<8x32xf32, #tpu.memory_space<vmem>>, %arg4: memref<1x32x96xbf16, #tpu.memory_space<vmem>>, %arg5: memref<1x1x96xf32, #tpu.memory_space<vmem>>, %arg6: memref<1x4x8x32xbf16, #tpu.memory_space<vmem>>, %arg7: memref<1x1x32xf32, #tpu.memory_space<vmem>>, %arg8: memref<1x1x32xf32, #tpu.memory_space<vmem>>, %arg9: memref<1x1x32xf32, #tpu.memory_space<vmem>>, %arg10: memref<1x32x64xbf16, #tpu.memory_space<vmem>>, %arg11: memref<1x1x64xf32, #tpu.memory_space<vmem>>, %arg12: memref<1x64x32xbf16, #tpu.memory_space<vmem>>, %arg13: memref<1x1x32xf32, #tpu.memory_space<vmem>>, %arg14: memref<1x1x32xf32, #tpu.memory_space<vmem>>, %arg15: memref<1x1x32xf32, #tpu.memory_space<vmem>>, %arg16: memref<1x8x32xf32, #tpu.memory_space<vmem>>) attributes {dimension_semantics = [#tpu.dimension_semantics<parallel>, #tpu.dimension_semantics<arbitrary>], iteration_bounds = array<i64: 2, 2>, scalar_prefetch = 0 : i64, scratch_operands = 0 : i64, tpu.core_type = #tpu.core_type<tc>, window_params = [{transform_indices = @transform_0, window_bounds = array<i64: 1, 8, 32>}, {pipeline_mode = #tpu.pipeline_mode<synchronous>, transform_indices = @transform_1, window_bounds = array<i64: 8, 32>}, {transform_indices = @transform_2, window_bounds = array<i64: 1, 32, 96>}, {transform_indices = @transform_3, window_bounds = array<i64: 1, 1, 96>}, {transform_indices = @transform_4, window_bounds = array<i64: 1, 4, 8, 32>}, {transform_indices = @transform_5, window_bounds = array<i64: 1, 1, 32>}, {transform_indices = @transform_6, window_bounds = array<i64: 1, 1, 32>}, {transform_indices = @transform_7, window_bounds = array<i64: 1, 1, 32>}, {transform_indices = @transform_8, window_bounds = array<i64: 1, 32, 64>}, {transform_indices = @transform_9, window_bounds = array<i64: 1, 1, 64>}, {transform_indices = @transform_10, window_bounds = array<i64: 1, 64, 32>}, {transform_indices = @transform_11, window_bounds = array<i64: 1, 1, 32>}, {transform_indices = @transform_12, window_bounds = array<i64: 1, 1, 32>}, {transform_indices = @transform_13, window_bounds = array<i64: 1, 1, 32>}, {transform_indices = @transform_14, window_bounds = array<i64: 1, 8, 32>}]} {
    %c0_i32 = arith.constant 0 : i32
    %0 = arith.cmpi eq, %arg1, %c0_i32 : i32
    %1 = arith.extui %0 : i1 to i32
    %c0_i32_0 = arith.constant 0 : i32
    %2 = arith.cmpi ne, %1, %c0_i32_0 : i32
    scf.if %2 {
      %c0_81 = arith.constant 0 : index
      %c0_82 = arith.constant 0 : index
      %c0_83 = arith.constant 0 : index
      %203 = vector.load %arg2[%c0_81, %c0_82, %c0_83] : memref<1x8x32xf32, #tpu.memory_space<vmem>>, vector<1x8x32xf32>
      %c0_84 = arith.constant 0 : index
      %c0_85 = arith.constant 0 : index
      %204 = vector.load %arg3[%c0_84, %c0_85] : memref<8x32xf32, #tpu.memory_space<vmem>>, vector<8x32xf32>
      %205 = vector.shape_cast %204 : vector<8x32xf32> to vector<1x8x32xf32>
      %206 = arith.addf %203, %205 : vector<1x8x32xf32>
      %c0_86 = arith.constant 0 : index
      %c0_87 = arith.constant 0 : index
      %c0_88 = arith.constant 0 : index
      %207 = vector.load %arg16[%c0_86, %c0_87, %c0_88] : memref<1x8x32xf32, #tpu.memory_space<vmem>>, vector<1x8x32xf32>
      tpu.vector_store %arg16[%c0_86, %c0_87, %c0_88], %206 {strides = array<i32>} : memref<1x8x32xf32, #tpu.memory_space<vmem>>, vector<1x8x32xf32>,
    } else {
    }
    %c0 = arith.constant 0 : index
    %c0_1 = arith.constant 0 : index
    %c0_2 = arith.constant 0 : index
    %3 = vector.load %arg16[%c0, %c0_1, %c0_2] : memref<1x8x32xf32, #tpu.memory_space<vmem>>, vector<1x8x32xf32>
    %4 = vector.shape_cast %3 : vector<1x8x32xf32> to vector<8x32xf32>
    %5 = arith.truncf %4 : vector<8x32xf32> to vector<8x32xbf16>
    %c0_3 = arith.constant 0 : index
    %c0_4 = arith.constant 0 : index
    %c0_5 = arith.constant 0 : index
    %6 = vector.load %arg4[%c0_3, %c0_4, %c0_5] : memref<1x32x96xbf16, #tpu.memory_space<vmem>>, vector<1x32x96xbf16>
    %7 = vector.shape_cast %6 : vector<1x32x96xbf16> to vector<32x96xbf16>
    %cst = arith.constant dense<0.000000e+00> : vector<8x96xf32>
    %8 = tpu.matmul %5, %7, %cst {dimension_numbers = #tpu.dot_dimension_numbers<[1], [0], [0], [1], [0, 0, 1, 1], [], []>} : vector<8x32xbf16>, vector<32x96xbf16>, vector<8x96xf32> -> vector<8x96xf32>
    %c0_6 = arith.constant 0 : index
    %c0_7 = arith.constant 0 : index
    %c0_8 = arith.constant 0 : index
    %9 = vector.load %arg5[%c0_6, %c0_7, %c0_8] : memref<1x1x96xf32, #tpu.memory_space<vmem>>, vector<1x1x96xf32>
    %10 = vector.shape_cast %9 : vector<1x1x96xf32> to vector<1x96xf32>
    %11 = vector.broadcast %10 : vector<1x96xf32> to vector<8x96xf32>
    %12 = arith.addf %8, %11 : vector<8x96xf32>
    %13 = arith.truncf %12 : vector<8x96xf32> to vector<8x96xbf16>
    %c0_9 = arith.constant 0 : index
    %c0_10 = arith.constant 0 : index
    %c0_11 = arith.constant 0 : index
    %c0_12 = arith.constant 0 : index
    %14 = vector.load %arg6[%c0_9, %c0_10, %c0_11, %c0_12] : memref<1x4x8x32xbf16, #tpu.memory_space<vmem>>, vector<1x4x8x32xbf16>
    %15 = vector.shape_cast %14 : vector<1x4x8x32xbf16> to vector<4x8x32xbf16>
    %cst_13 = arith.constant 0.000000e+00 : f32
    %16 = vector.broadcast %cst_13 : f32 to vector<8x32xf32>
    %17 = vector.extract_strided_slice %13 {offsets = [0, 0], sizes = [8, 8], strides = [1, 1]} : vector<8x96xbf16> to vector<8x8xbf16>
    %18 = vector.shape_cast %17 : vector<8x8xbf16> to vector<1x8x8xbf16>
    %19 = vector.extract_strided_slice %13 {offsets = [0, 32], sizes = [8, 8], strides = [1, 1]} : vector<8x96xbf16> to vector<8x8xbf16>
    %20 = vector.shape_cast %19 : vector<8x8xbf16> to vector<1x8x8xbf16>
    %21 = vector.extract_strided_slice %13 {offsets = [0, 64], sizes = [8, 8], strides = [1, 1]} : vector<8x96xbf16> to vector<8x8xbf16>
    %22 = vector.shape_cast %21 : vector<8x8xbf16> to vector<1x8x8xbf16>
    "tpu.trace_start"() <{level = 10 : i32, message = "bqd,bkd->bqk"}> : () -> ()
    %cst_14 = arith.constant dense<0.000000e+00> : vector<1x8x8xf32>
    %23 = tpu.matmul %18, %20, %cst_14 {dimension_numbers = #tpu.dot_dimension_numbers<[2], [2], [1], [1], [0, 0, 0, 1, 1, 1], [0], [0]>} : vector<1x8x8xbf16>, vector<1x8x8xbf16>, vector<1x8x8xf32> -> vector<1x8x8xf32>
    "tpu.trace_stop"() : () -> ()
    %cst_15 = arith.constant 0.353553385 : f32
    %24 = vector.broadcast %cst_15 : f32 to vector<1x8x8xf32>
    %25 = arith.mulf %23, %24 : vector<1x8x8xf32>
    %cst_16 = arith.constant dense<0xFF800000> : vector<1x8xf32>
    %26 = vector.multi_reduction <maximumf>, %25, %cst_16 [2] : vector<1x8x8xf32> to vector<1x8xf32>
    %27 = vector.shape_cast %26 : vector<1x8xf32> to vector<1x8x1xf32>
    %28 = vector.broadcast %27 : vector<1x8x1xf32> to vector<1x8x8xf32>
    %29 = arith.subf %25, %28 : vector<1x8x8xf32>
    %30 = math.exp %29 : vector<1x8x8xf32>
    %cst_17 = arith.constant dense<0.000000e+00> : vector<1x8xf32>
    %31 = vector.multi_reduction <add>, %30, %cst_17 [2] : vector<1x8x8xf32> to vector<1x8xf32>
    %32 = vector.shape_cast %31 : vector<1x8xf32> to vector<1x8x1xf32>
    %33 = tpu.reciprocal %32 {approx = true} : vector<1x8x1xf32> -> vector<1x8x1xf32>
    %34 = vector.broadcast %33 : vector<1x8x1xf32> to vector<1x8x8xf32>
    %35 = arith.mulf %30, %34 : vector<1x8x8xf32>
    %36 = arith.truncf %35 : vector<1x8x8xf32> to vector<1x8x8xbf16>
    "tpu.trace_start"() <{level = 10 : i32, message = "bqk,bkd->bqd"}> : () -> ()
    %cst_18 = arith.constant dense<0.000000e+00> : vector<1x8x8xf32>
    %37 = tpu.matmul %36, %22, %cst_18 {dimension_numbers = #tpu.dot_dimension_numbers<[2], [1], [1], [2], [0, 0, 0, 1, 1, 2], [0], [0]>} : vector<1x8x8xbf16>, vector<1x8x8xbf16>, vector<1x8x8xf32> -> vector<1x8x8xf32>
    "tpu.trace_stop"() : () -> ()
    %38 = vector.shape_cast %37 : vector<1x8x8xf32> to vector<8x8xf32>
    %39 = arith.truncf %38 : vector<8x8xf32> to vector<8x8xbf16>
    %40 = vector.extract_strided_slice %15 {offsets = [0, 0, 0], sizes = [1, 8, 32], strides = [1, 1, 1]} : vector<4x8x32xbf16> to vector<1x8x32xbf16>
    %41 = vector.shape_cast %40 : vector<1x8x32xbf16> to vector<8x32xbf16>
    %cst_19 = arith.constant dense<0.000000e+00> : vector<8x32xf32>
    %42 = tpu.matmul %39, %41, %cst_19 {dimension_numbers = #tpu.dot_dimension_numbers<[1], [0], [0], [1], [0, 0, 1, 1], [], []>} : vector<8x8xbf16>, vector<8x32xbf16>, vector<8x32xf32> -> vector<8x32xf32>
    %43 = arith.addf %16, %42 : vector<8x32xf32>
    %44 = vector.extract_strided_slice %13 {offsets = [0, 8], sizes = [8, 8], strides = [1, 1]} : vector<8x96xbf16> to vector<8x8xbf16>
    %45 = vector.shape_cast %44 : vector<8x8xbf16> to vector<1x8x8xbf16>
    %46 = vector.extract_strided_slice %13 {offsets = [0, 40], sizes = [8, 8], strides = [1, 1]} : vector<8x96xbf16> to vector<8x8xbf16>
    %47 = vector.shape_cast %46 : vector<8x8xbf16> to vector<1x8x8xbf16>
    %48 = vector.extract_strided_slice %13 {offsets = [0, 72], sizes = [8, 8], strides = [1, 1]} : vector<8x96xbf16> to vector<8x8xbf16>
    %49 = vector.shape_cast %48 : vector<8x8xbf16> to vector<1x8x8xbf16>
    "tpu.trace_start"() <{level = 10 : i32, message = "bqd,bkd->bqk"}> : () -> ()
    %cst_20 = arith.constant dense<0.000000e+00> : vector<1x8x8xf32>
    %50 = tpu.matmul %45, %47, %cst_20 {dimension_numbers = #tpu.dot_dimension_numbers<[2], [2], [1], [1], [0, 0, 0, 1, 1, 1], [0], [0]>} : vector<1x8x8xbf16>, vector<1x8x8xbf16>, vector<1x8x8xf32> -> vector<1x8x8xf32>
    "tpu.trace_stop"() : () -> ()
    %cst_21 = arith.constant 0.353553385 : f32
    %51 = vector.broadcast %cst_21 : f32 to vector<1x8x8xf32>
    %52 = arith.mulf %50, %51 : vector<1x8x8xf32>
    %cst_22 = arith.constant dense<0xFF800000> : vector<1x8xf32>
    %53 = vector.multi_reduction <maximumf>, %52, %cst_22 [2] : vector<1x8x8xf32> to vector<1x8xf32>
    %54 = vector.shape_cast %53 : vector<1x8xf32> to vector<1x8x1xf32>
    %55 = vector.broadcast %54 : vector<1x8x1xf32> to vector<1x8x8xf32>
    %56 = arith.subf %52, %55 : vector<1x8x8xf32>
    %57 = math.exp %56 : vector<1x8x8xf32>
    %cst_23 = arith.constant dense<0.000000e+00> : vector<1x8xf32>
    %58 = vector.multi_reduction <add>, %57, %cst_23 [2] : vector<1x8x8xf32> to vector<1x8xf32>
    %59 = vector.shape_cast %58 : vector<1x8xf32> to vector<1x8x1xf32>
    %60 = tpu.reciprocal %59 {approx = true} : vector<1x8x1xf32> -> vector<1x8x1xf32>
    %61 = vector.broadcast %60 : vector<1x8x1xf32> to vector<1x8x8xf32>
    %62 = arith.mulf %57, %61 : vector<1x8x8xf32>
    %63 = arith.truncf %62 : vector<1x8x8xf32> to vector<1x8x8xbf16>
    "tpu.trace_start"() <{level = 10 : i32, message = "bqk,bkd->bqd"}> : () -> ()
    %cst_24 = arith.constant dense<0.000000e+00> : vector<1x8x8xf32>
    %64 = tpu.matmul %63, %49, %cst_24 {dimension_numbers = #tpu.dot_dimension_numbers<[2], [1], [1], [2], [0, 0, 0, 1, 1, 2], [0], [0]>} : vector<1x8x8xbf16>, vector<1x8x8xbf16>, vector<1x8x8xf32> -> vector<1x8x8xf32>
    "tpu.trace_stop"() : () -> ()
    %65 = vector.shape_cast %64 : vector<1x8x8xf32> to vector<8x8xf32>
    %66 = arith.truncf %65 : vector<8x8xf32> to vector<8x8xbf16>
    %67 = vector.extract_strided_slice %15 {offsets = [1, 0, 0], sizes = [1, 8, 32], strides = [1, 1, 1]} : vector<4x8x32xbf16> to vector<1x8x32xbf16>
    %68 = vector.shape_cast %67 : vector<1x8x32xbf16> to vector<8x32xbf16>
    %cst_25 = arith.constant dense<0.000000e+00> : vector<8x32xf32>
    %69 = tpu.matmul %66, %68, %cst_25 {dimension_numbers = #tpu.dot_dimension_numbers<[1], [0], [0], [1], [0, 0, 1, 1], [], []>} : vector<8x8xbf16>, vector<8x32xbf16>, vector<8x32xf32> -> vector<8x32xf32>
    %70 = arith.addf %43, %69 : vector<8x32xf32>
    %71 = vector.extract_strided_slice %13 {offsets = [0, 16], sizes = [8, 8], strides = [1, 1]} : vector<8x96xbf16> to vector<8x8xbf16>
    %72 = vector.shape_cast %71 : vector<8x8xbf16> to vector<1x8x8xbf16>
    %73 = vector.extract_strided_slice %13 {offsets = [0, 48], sizes = [8, 8], strides = [1, 1]} : vector<8x96xbf16> to vector<8x8xbf16>
    %74 = vector.shape_cast %73 : vector<8x8xbf16> to vector<1x8x8xbf16>
    %75 = vector.extract_strided_slice %13 {offsets = [0, 80], sizes = [8, 8], strides = [1, 1]} : vector<8x96xbf16> to vector<8x8xbf16>
    %76 = vector.shape_cast %75 : vector<8x8xbf16> to vector<1x8x8xbf16>
    "tpu.trace_start"() <{level = 10 : i32, message = "bqd,bkd->bqk"}> : () -> ()
    %cst_26 = arith.constant dense<0.000000e+00> : vector<1x8x8xf32>
    %77 = tpu.matmul %72, %74, %cst_26 {dimension_numbers = #tpu.dot_dimension_numbers<[2], [2], [1], [1], [0, 0, 0, 1, 1, 1], [0], [0]>} : vector<1x8x8xbf16>, vector<1x8x8xbf16>, vector<1x8x8xf32> -> vector<1x8x8xf32>
    "tpu.trace_stop"() : () -> ()
    %cst_27 = arith.constant 0.353553385 : f32
    %78 = vector.broadcast %cst_27 : f32 to vector<1x8x8xf32>
    %79 = arith.mulf %77, %78 : vector<1x8x8xf32>
    %cst_28 = arith.constant dense<0xFF800000> : vector<1x8xf32>
    %80 = vector.multi_reduction <maximumf>, %79, %cst_28 [2] : vector<1x8x8xf32> to vector<1x8xf32>
    %81 = vector.shape_cast %80 : vector<1x8xf32> to vector<1x8x1xf32>
    %82 = vector.broadcast %81 : vector<1x8x1xf32> to vector<1x8x8xf32>
    %83 = arith.subf %79, %82 : vector<1x8x8xf32>
    %84 = math.exp %83 : vector<1x8x8xf32>
    %cst_29 = arith.constant dense<0.000000e+00> : vector<1x8xf32>
    %85 = vector.multi_reduction <add>, %84, %cst_29 [2] : vector<1x8x8xf32> to vector<1x8xf32>
    %86 = vector.shape_cast %85 : vector<1x8xf32> to vector<1x8x1xf32>
    %87 = tpu.reciprocal %86 {approx = true} : vector<1x8x1xf32> -> vector<1x8x1xf32>
    %88 = vector.broadcast %87 : vector<1x8x1xf32> to vector<1x8x8xf32>
    %89 = arith.mulf %84, %88 : vector<1x8x8xf32>
    %90 = arith.truncf %89 : vector<1x8x8xf32> to vector<1x8x8xbf16>
    "tpu.trace_start"() <{level = 10 : i32, message = "bqk,bkd->bqd"}> : () -> ()
    %cst_30 = arith.constant dense<0.000000e+00> : vector<1x8x8xf32>
    %91 = tpu.matmul %90, %76, %cst_30 {dimension_numbers = #tpu.dot_dimension_numbers<[2], [1], [1], [2], [0, 0, 0, 1, 1, 2], [0], [0]>} : vector<1x8x8xbf16>, vector<1x8x8xbf16>, vector<1x8x8xf32> -> vector<1x8x8xf32>
    "tpu.trace_stop"() : () -> ()
    %92 = vector.shape_cast %91 : vector<1x8x8xf32> to vector<8x8xf32>
    %93 = arith.truncf %92 : vector<8x8xf32> to vector<8x8xbf16>
    %94 = vector.extract_strided_slice %15 {offsets = [2, 0, 0], sizes = [1, 8, 32], strides = [1, 1, 1]} : vector<4x8x32xbf16> to vector<1x8x32xbf16>
    %95 = vector.shape_cast %94 : vector<1x8x32xbf16> to vector<8x32xbf16>
    %cst_31 = arith.constant dense<0.000000e+00> : vector<8x32xf32>
    %96 = tpu.matmul %93, %95, %cst_31 {dimension_numbers = #tpu.dot_dimension_numbers<[1], [0], [0], [1], [0, 0, 1, 1], [], []>} : vector<8x8xbf16>, vector<8x32xbf16>, vector<8x32xf32> -> vector<8x32xf32>
    %97 = arith.addf %70, %96 : vector<8x32xf32>
    %98 = vector.extract_strided_slice %13 {offsets = [0, 24], sizes = [8, 8], strides = [1, 1]} : vector<8x96xbf16> to vector<8x8xbf16>
    %99 = vector.shape_cast %98 : vector<8x8xbf16> to vector<1x8x8xbf16>
    %100 = vector.extract_strided_slice %13 {offsets = [0, 56], sizes = [8, 8], strides = [1, 1]} : vector<8x96xbf16> to vector<8x8xbf16>
    %101 = vector.shape_cast %100 : vector<8x8xbf16> to vector<1x8x8xbf16>
    %102 = vector.extract_strided_slice %13 {offsets = [0, 88], sizes = [8, 8], strides = [1, 1]} : vector<8x96xbf16> to vector<8x8xbf16>
    %103 = vector.shape_cast %102 : vector<8x8xbf16> to vector<1x8x8xbf16>
    "tpu.trace_start"() <{level = 10 : i32, message = "bqd,bkd->bqk"}> : () -> ()
    %cst_32 = arith.constant dense<0.000000e+00> : vector<1x8x8xf32>
    %104 = tpu.matmul %99, %101, %cst_32 {dimension_numbers = #tpu.dot_dimension_numbers<[2], [2], [1], [1], [0, 0, 0, 1, 1, 1], [0], [0]>} : vector<1x8x8xbf16>, vector<1x8x8xbf16>, vector<1x8x8xf32> -> vector<1x8x8xf32>
    "tpu.trace_stop"() : () -> ()
    %cst_33 = arith.constant 0.353553385 : f32
    %105 = vector.broadcast %cst_33 : f32 to vector<1x8x8xf32>
    %106 = arith.mulf %104, %105 : vector<1x8x8xf32>
    %cst_34 = arith.constant dense<0xFF800000> : vector<1x8xf32>
    %107 = vector.multi_reduction <maximumf>, %106, %cst_34 [2] : vector<1x8x8xf32> to vector<1x8xf32>
    %108 = vector.shape_cast %107 : vector<1x8xf32> to vector<1x8x1xf32>
    %109 = vector.broadcast %108 : vector<1x8x1xf32> to vector<1x8x8xf32>
    %110 = arith.subf %106, %109 : vector<1x8x8xf32>
    %111 = math.exp %110 : vector<1x8x8xf32>
    %cst_35 = arith.constant dense<0.000000e+00> : vector<1x8xf32>
    %112 = vector.multi_reduction <add>, %111, %cst_35 [2] : vector<1x8x8xf32> to vector<1x8xf32>
    %113 = vector.shape_cast %112 : vector<1x8xf32> to vector<1x8x1xf32>
    %114 = tpu.reciprocal %113 {approx = true} : vector<1x8x1xf32> -> vector<1x8x1xf32>
    %115 = vector.broadcast %114 : vector<1x8x1xf32> to vector<1x8x8xf32>
    %116 = arith.mulf %111, %115 : vector<1x8x8xf32>
    %117 = arith.truncf %116 : vector<1x8x8xf32> to vector<1x8x8xbf16>
    "tpu.trace_start"() <{level = 10 : i32, message = "bqk,bkd->bqd"}> : () -> ()
    %cst_36 = arith.constant dense<0.000000e+00> : vector<1x8x8xf32>
    %118 = tpu.matmul %117, %103, %cst_36 {dimension_numbers = #tpu.dot_dimension_numbers<[2], [1], [1], [2], [0, 0, 0, 1, 1, 2], [0], [0]>} : vector<1x8x8xbf16>, vector<1x8x8xbf16>, vector<1x8x8xf32> -> vector<1x8x8xf32>
    "tpu.trace_stop"() : () -> ()
    %119 = vector.shape_cast %118 : vector<1x8x8xf32> to vector<8x8xf32>
    %120 = arith.truncf %119 : vector<8x8xf32> to vector<8x8xbf16>
    %121 = vector.extract_strided_slice %15 {offsets = [3, 0, 0], sizes = [1, 8, 32], strides = [1, 1, 1]} : vector<4x8x32xbf16> to vector<1x8x32xbf16>
    %122 = vector.shape_cast %121 : vector<1x8x32xbf16> to vector<8x32xbf16>
    %cst_37 = arith.constant dense<0.000000e+00> : vector<8x32xf32>
    %123 = tpu.matmul %120, %122, %cst_37 {dimension_numbers = #tpu.dot_dimension_numbers<[1], [0], [0], [1], [0, 0, 1, 1], [], []>} : vector<8x8xbf16>, vector<8x32xbf16>, vector<8x32xf32> -> vector<8x32xf32>
    %124 = arith.addf %97, %123 : vector<8x32xf32>
    %c0_38 = arith.constant 0 : index
    %c0_39 = arith.constant 0 : index
    %c0_40 = arith.constant 0 : index
    %125 = vector.load %arg7[%c0_38, %c0_39, %c0_40] : memref<1x1x32xf32, #tpu.memory_space<vmem>>, vector<1x1x32xf32>
    %126 = vector.shape_cast %125 : vector<1x1x32xf32> to vector<1x32xf32>
    %127 = vector.broadcast %126 : vector<1x32xf32> to vector<8x32xf32>
    %128 = arith.addf %124, %127 : vector<8x32xf32>
    %129 = arith.addf %4, %128 : vector<8x32xf32>
    %cst_41 = arith.constant dense<0.000000e+00> : vector<8xf32>
    %130 = vector.multi_reduction <add>, %129, %cst_41 [1] : vector<8x32xf32> to vector<8xf32>
    %131 = vector.shape_cast %130 : vector<8xf32> to vector<8x1xf32>
    %cst_42 = arith.constant 3.200000e+01 : f32
    %132 = vector.broadcast %cst_42 : f32 to vector<8x1xf32>
    %133 = arith.divf %131, %132 : vector<8x1xf32>
    %134 = vector.broadcast %133 : vector<8x1xf32> to vector<8x32xf32>
    %135 = arith.subf %129, %134 : vector<8x32xf32>
    %136 = arith.mulf %135, %135 : vector<8x32xf32>
    %cst_43 = arith.constant dense<0.000000e+00> : vector<8xf32>
    %137 = vector.multi_reduction <add>, %136, %cst_43 [1] : vector<8x32xf32> to vector<8xf32>
    %138 = vector.shape_cast %137 : vector<8xf32> to vector<8x1xf32>
    %cst_44 = arith.constant 3.200000e+01 : f32
    %139 = vector.broadcast %cst_44 : f32 to vector<8x1xf32>
    %140 = arith.divf %138, %139 : vector<8x1xf32>
    %141 = vector.broadcast %133 : vector<8x1xf32> to vector<8x32xf32>
    %142 = arith.subf %129, %141 : vector<8x32xf32>
    %cst_45 = arith.constant 9.99999974E-6 : f32
    %143 = vector.broadcast %cst_45 : f32 to vector<8x1xf32>
    %144 = arith.addf %140, %143 : vector<8x1xf32>
    %145 = math.rsqrt %144 : vector<8x1xf32>
    %146 = vector.broadcast %145 : vector<8x1xf32> to vector<8x32xf32>
    %147 = arith.mulf %142, %146 : vector<8x32xf32>
    %c0_46 = arith.constant 0 : index
    %c0_47 = arith.constant 0 : index
    %c0_48 = arith.constant 0 : index
    %148 = vector.load %arg8[%c0_46, %c0_47, %c0_48] : memref<1x1x32xf32, #tpu.memory_space<vmem>>, vector<1x1x32xf32>
    %149 = vector.shape_cast %148 : vector<1x1x32xf32> to vector<1x32xf32>
    %150 = vector.broadcast %149 : vector<1x32xf32> to vector<8x32xf32>
    %151 = arith.mulf %147, %150 : vector<8x32xf32>
    %c0_49 = arith.constant 0 : index
    %c0_50 = arith.constant 0 : index
    %c0_51 = arith.constant 0 : index
    %152 = vector.load %arg9[%c0_49, %c0_50, %c0_51] : memref<1x1x32xf32, #tpu.memory_space<vmem>>, vector<1x1x32xf32>
    %153 = vector.shape_cast %152 : vector<1x1x32xf32> to vector<1x32xf32>
    %154 = vector.broadcast %153 : vector<1x32xf32> to vector<8x32xf32>
    %155 = arith.addf %151, %154 : vector<8x32xf32>
    %156 = arith.truncf %155 : vector<8x32xf32> to vector<8x32xbf16>
    %c0_52 = arith.constant 0 : index
    %c0_53 = arith.constant 0 : index
    %c0_54 = arith.constant 0 : index
    %157 = vector.load %arg10[%c0_52, %c0_53, %c0_54] : memref<1x32x64xbf16, #tpu.memory_space<vmem>>, vector<1x32x64xbf16>
    %158 = vector.shape_cast %157 : vector<1x32x64xbf16> to vector<32x64xbf16>
    %cst_55 = arith.constant dense<0.000000e+00> : vector<8x64xf32>
    %159 = tpu.matmul %156, %158, %cst_55 {dimension_numbers = #tpu.dot_dimension_numbers<[1], [0], [0], [1], [0, 0, 1, 1], [], []>} : vector<8x32xbf16>, vector<32x64xbf16>, vector<8x64xf32> -> vector<8x64xf32>
    %c0_56 = arith.constant 0 : index
    %c0_57 = arith.constant 0 : index
    %c0_58 = arith.constant 0 : index
    %160 = vector.load %arg11[%c0_56, %c0_57, %c0_58] : memref<1x1x64xf32, #tpu.memory_space<vmem>>, vector<1x1x64xf32>
    %161 = vector.shape_cast %160 : vector<1x1x64xf32> to vector<1x64xf32>
    %162 = vector.broadcast %161 : vector<1x64xf32> to vector<8x64xf32>
    %163 = arith.addf %159, %162 : vector<8x64xf32>
    %cst_59 = arith.constant 0.000000e+00 : f32
    %164 = vector.broadcast %cst_59 : f32 to vector<8x64xf32>
    %165 = arith.maximumf %163, %164 : vector<8x64xf32>
    %166 = arith.truncf %165 : vector<8x64xf32> to vector<8x64xbf16>
    %c0_60 = arith.constant 0 : index
    %c0_61 = arith.constant 0 : index
    %c0_62 = arith.constant 0 : index
    %167 = vector.load %arg12[%c0_60, %c0_61, %c0_62] : memref<1x64x32xbf16, #tpu.memory_space<vmem>>, vector<1x64x32xbf16>
    %168 = vector.shape_cast %167 : vector<1x64x32xbf16> to vector<64x32xbf16>
    %cst_63 = arith.constant dense<0.000000e+00> : vector<8x32xf32>
    %169 = tpu.matmul %166, %168, %cst_63 {dimension_numbers = #tpu.dot_dimension_numbers<[1], [0], [0], [1], [0, 0, 1, 1], [], []>} : vector<8x64xbf16>, vector<64x32xbf16>, vector<8x32xf32> -> vector<8x32xf32>
    %c0_64 = arith.constant 0 : index
    %c0_65 = arith.constant 0 : index
    %c0_66 = arith.constant 0 : index
    %170 = vector.load %arg13[%c0_64, %c0_65, %c0_66] : memref<1x1x32xf32, #tpu.memory_space<vmem>>, vector<1x1x32xf32>
    %171 = vector.shape_cast %170 : vector<1x1x32xf32> to vector<1x32xf32>
    %172 = vector.broadcast %171 : vector<1x32xf32> to vector<8x32xf32>
    %173 = arith.addf %169, %172 : vector<8x32xf32>
    %174 = arith.addf %155, %173 : vector<8x32xf32>
    %cst_67 = arith.constant dense<0.000000e+00> : vector<8xf32>
    %175 = vector.multi_reduction <add>, %174, %cst_67 [1] : vector<8x32xf32> to vector<8xf32>
    %176 = vector.shape_cast %175 : vector<8xf32> to vector<8x1xf32>
    %cst_68 = arith.constant 3.200000e+01 : f32
    %177 = vector.broadcast %cst_68 : f32 to vector<8x1xf32>
    %178 = arith.divf %176, %177 : vector<8x1xf32>
    %179 = vector.broadcast %178 : vector<8x1xf32> to vector<8x32xf32>
    %180 = arith.subf %174, %179 : vector<8x32xf32>
    %181 = arith.mulf %180, %180 : vector<8x32xf32>
    %cst_69 = arith.constant dense<0.000000e+00> : vector<8xf32>
    %182 = vector.multi_reduction <add>, %181, %cst_69 [1] : vector<8x32xf32> to vector<8xf32>
    %183 = vector.shape_cast %182 : vector<8xf32> to vector<8x1xf32>
    %cst_70 = arith.constant 3.200000e+01 : f32
    %184 = vector.broadcast %cst_70 : f32 to vector<8x1xf32>
    %185 = arith.divf %183, %184 : vector<8x1xf32>
    %186 = vector.broadcast %178 : vector<8x1xf32> to vector<8x32xf32>
    %187 = arith.subf %174, %186 : vector<8x32xf32>
    %cst_71 = arith.constant 9.99999974E-6 : f32
    %188 = vector.broadcast %cst_71 : f32 to vector<8x1xf32>
    %189 = arith.addf %185, %188 : vector<8x1xf32>
    %190 = math.rsqrt %189 : vector<8x1xf32>
    %191 = vector.broadcast %190 : vector<8x1xf32> to vector<8x32xf32>
    %192 = arith.mulf %187, %191 : vector<8x32xf32>
    %c0_72 = arith.constant 0 : index
    %c0_73 = arith.constant 0 : index
    %c0_74 = arith.constant 0 : index
    %193 = vector.load %arg14[%c0_72, %c0_73, %c0_74] : memref<1x1x32xf32, #tpu.memory_space<vmem>>, vector<1x1x32xf32>
    %194 = vector.shape_cast %193 : vector<1x1x32xf32> to vector<1x32xf32>
    %195 = vector.broadcast %194 : vector<1x32xf32> to vector<8x32xf32>
    %196 = arith.mulf %192, %195 : vector<8x32xf32>
    %c0_75 = arith.constant 0 : index
    %c0_76 = arith.constant 0 : index
    %c0_77 = arith.constant 0 : index
    %197 = vector.load %arg15[%c0_75, %c0_76, %c0_77] : memref<1x1x32xf32, #tpu.memory_space<vmem>>, vector<1x1x32xf32>
    %198 = vector.shape_cast %197 : vector<1x1x32xf32> to vector<1x32xf32>
    %199 = vector.broadcast %198 : vector<1x32xf32> to vector<8x32xf32>
    %200 = arith.addf %196, %199 : vector<8x32xf32>
    %201 = vector.shape_cast %200 : vector<8x32xf32> to vector<1x8x32xf32>
    %c0_78 = arith.constant 0 : index
    %c0_79 = arith.constant 0 : index
    %c0_80 = arith.constant 0 : index
    %202 = vector.load %arg16[%c0_78, %c0_79, %c0_80] : memref<1x8x32xf32, #tpu.memory_space<vmem>>, vector<1x8x32xf32>
    tpu.vector_store %arg16[%c0_78, %c0_79, %c0_80], %201 {strides = array<i32>} : memref<1x8x32xf32, #tpu.memory_space<vmem>>, vector<1x8x32xf32>,
    return
  }
  func.func @transform_0(%arg0: i32, %arg1: i32) -> (i32, i32, i32) {
    %c0_i32 = arith.constant 0 : i32
    %c0_i32_0 = arith.constant 0 : i32
    %c0_i32_1 = arith.constant 0 : i32
    return %arg0, %c0_i32, %c0_i32_0 : i32, i32, i32
  }
  func.func @transform_1(%arg0: i32, %arg1: i32) -> (i32, i32) {
    %c0_i32 = arith.constant 0 : i32
    %c0_i32_0 = arith.constant 0 : i32
    %c0_i32_1 = arith.constant 0 : i32
    return %c0_i32, %c0_i32_0 : i32, i32
  }
  func.func @transform_2(%arg0: i32, %arg1: i32) -> (i32, i32, i32) {
    %c0_i32 = arith.constant 0 : i32
    %c0_i32_0 = arith.constant 0 : i32
    %c0_i32_1 = arith.constant 0 : i32
    return %arg1, %c0_i32, %c0_i32_0 : i32, i32, i32
  }
  func.func @transform_3(%arg0: i32, %arg1: i32) -> (i32, i32, i32) {
    %c0_i32 = arith.constant 0 : i32
    %c0_i32_0 = arith.constant 0 : i32
    %c0_i32_1 = arith.constant 0 : i32
    return %arg1, %c0_i32, %c0_i32_0 : i32, i32, i32
  }
  func.func @transform_4(%arg0: i32, %arg1: i32) -> (i32, i32, i32, i32) {
    %c0_i32 = arith.constant 0 : i32
    %c0_i32_0 = arith.constant 0 : i32
    %c0_i32_1 = arith.constant 0 : i32
    %c0_i32_2 = arith.constant 0 : i32
    return %arg1, %c0_i32, %c0_i32_0, %c0_i32_1 : i32, i32, i32, i32
  }
  func.func @transform_5(%arg0: i32, %arg1: i32) -> (i32, i32, i32) {
    %c0_i32 = arith.constant 0 : i32
    %c0_i32_0 = arith.constant 0 : i32
    %c0_i32_1 = arith.constant 0 : i32
    return %arg1, %c0_i32, %c0_i32_0 : i32, i32, i32
  }
  func.func @transform_6(%arg0: i32, %arg1: i32) -> (i32, i32, i32) {
    %c0_i32 = arith.constant 0 : i32
    %c0_i32_0 = arith.constant 0 : i32
    %c0_i32_1 = arith.constant 0 : i32
    return %arg1, %c0_i32, %c0_i32_0 : i32, i32, i32
  }
  func.func @transform_7(%arg0: i32, %arg1: i32) -> (i32, i32, i32) {
    %c0_i32 = arith.constant 0 : i32
    %c0_i32_0 = arith.constant 0 : i32
    %c0_i32_1 = arith.constant 0 : i32
    return %arg1, %c0_i32, %c0_i32_0 : i32, i32, i32
  }
  func.func @transform_8(%arg0: i32, %arg1: i32) -> (i32, i32, i32) {
    %c0_i32 = arith.constant 0 : i32
    %c0_i32_0 = arith.constant 0 : i32
    %c0_i32_1 = arith.constant 0 : i32
    return %arg1, %c0_i32, %c0_i32_0 : i32, i32, i32
  }
  func.func @transform_9(%arg0: i32, %arg1: i32) -> (i32, i32, i32) {
    %c0_i32 = arith.constant 0 : i32
    %c0_i32_0 = arith.constant 0 : i32
    %c0_i32_1 = arith.constant 0 : i32
    return %arg1, %c0_i32, %c0_i32_0 : i32, i32, i32
  }
  func.func @transform_10(%arg0: i32, %arg1: i32) -> (i32, i32, i32) {
    %c0_i32 = arith.constant 0 : i32
    %c0_i32_0 = arith.constant 0 : i32
    %c0_i32_1 = arith.constant 0 : i32
    return %arg1, %c0_i32, %c0_i32_0 : i32, i32, i32
  }
  func.func @transform_11(%arg0: i32, %arg1: i32) -> (i32, i32, i32) {
    %c0_i32 = arith.constant 0 : i32
    %c0_i32_0 = arith.constant 0 : i32
    %c0_i32_1 = arith.constant 0 : i32
    return %arg1, %c0_i32, %c0_i32_0 : i32, i32, i32
  }
  func.func @transform_12(%arg0: i32, %arg1: i32) -> (i32, i32, i32) {
    %c0_i32 = arith.constant 0 : i32
    %c0_i32_0 = arith.constant 0 : i32
    %c0_i32_1 = arith.constant 0 : i32
    return %arg1, %c0_i32, %c0_i32_0 : i32, i32, i32
  }
  func.func @transform_13(%arg0: i32, %arg1: i32) -> (i32, i32, i32) {
    %c0_i32 = arith.constant 0 : i32
    %c0_i32_0 = arith.constant 0 : i32
    %c0_i32_1 = arith.constant 0 : i32
    return %arg1, %c0_i32, %c0_i32_0 : i32, i32, i32
  }
  func.func @transform_14(%arg0: i32, %arg1: i32) -> (i32, i32, i32) {
    %c0_i32 = arith.constant 0 : i32
    %c0_i32_0 = arith.constant 0 : i32
    %c0_i32_1 = arith.constant 0 : i32
    return %arg0, %c0_i32, %c0_i32_0 : i32, i32, i32
  }
}

</mosaic_0001>

<bundles_post_ra>
// kernel: tpu_custom_call.1
= control target key start
LH: loop header
LB: loop body
LE: loop exit
PB: predicated region body
PF: predicated region fallthrough
CT: control target
= control target key end

     0   :  { %s3288_s0 = inlined_call_operand.hbm [shape: f32[2,8,32], index: 0, kind: input, shape index: {}]   ;;  %s3289_s1 = inlined_call_operand.hbm [shape: f32[8,32], index: 1, kind: input, shape index: {}]   ;;  %s3290_s2 = inlined_call_operand.vmem [shape: bf16[2,32,96], index: 2, kind: input, shape index: {}]   ;;  %s3291_s3 = inlined_call_operand.vmem [shape: f32[2,1,96], index: 3, kind: input, shape index: {}]   ;;  %s3292_s4 = inlined_call_operand.vmem [shape: bf16[2,4,8,32], index: 4, kind: input, shape index: {}]   ;;  %s3293_s5 = inlined_call_operand.vmem [shape: f32[2,1,32], index: 5, kind: input, shape index: {}]   ;;  %s3294_s6 = inlined_call_operand.hbm [shape: f32[2,1,32], index: 6, kind: input, shape index: {}]   ;;  %s3295_s7 = inlined_call_operand.hbm [shape: f32[2,1,32], index: 7, kind: input, shape index: {}]   ;;  %s3296_s8 = inlined_call_operand.vmem [shape: bf16[2,32,64], index: 8, kind: input, shape index: {}]   ;;  %s3297_s9 = inlined_call_operand.hbm [shape: f32[2,1,64], index: 9, kind: input, shape index: {}]   ;;  %s3298_s10 = inlined_call_operand.vmem [shape: bf16[2,64,32], index: 10, kind: input, shape index: {}]   ;;  %s3299_s11 = inlined_call_operand.vmem [shape: f32[2,1,32], index: 11, kind: input, shape index: {}]   ;;  %s3300_s12 = inlined_call_operand.vmem [shape: f32[2,1,32], index: 12, kind: input, shape index: {}]   ;;  %s3301_s13 = inlined_call_operand.vmem [shape: f32[2,1,32], index: 13, kind: input, shape index: {}]   ;;  %s3302_s14 = inlined_call_operand.hbm [shape: f32[2,8,32], index: 14, kind: output, shape index: {}]  }
   0x1   :  { %3325 = sst [smem:[#allocation28_spill]] %s3288_s0 }
   0x2   :  { %3326 = sst [smem:[#allocation29_spill]] %s3289_s1 }
   0x3   :  { %3327 = sst [smem:[#allocation30_spill]] %s3290_s2 }
   0x4   :  { %3328 = sst [smem:[#allocation31_spill]] %s3292_s4 }
   0x5   :  { %3329 = sst [smem:[#allocation32_spill]] %s3293_s5 }
   0x6   :  { %3330 = sst [smem:[#allocation33_spill]] %s3294_s6 }
   0x7   :  { %3331 = sst [smem:[#allocation34_spill]] %s3295_s7 }
   0x8   :  { %3332 = sst [smem:[#allocation35_spill]] %s3296_s8 }
   0x9   :  { %3333 = sst [smem:[#allocation36_spill]] %s3297_s9 }
   0xa   :  { %3334 = sst [smem:[#allocation37_spill]] %s3298_s10 }
   0xb   :  { %3335 = sst [smem:[#allocation38_spill]] %s3299_s11 }
   0xc   :  { %3336 = sst [smem:[#allocation39_spill]] %s3300_s12 }
   0xd   :  { %3337 = sst [smem:[#allocation40_spill]] %s3301_s13 }
   0xe   :  { %3338 = sst [smem:[#allocation41_spill]] %s3302_s14 }
   0xf   :  { %19 = vsyncpa [#allocation3], 0 }
  0x10   :  { %21 = vsyncpa [#allocation3 + $0x1], 0 }
  0x11   :  { %22 = vsyncpa [#allocation6], 0 }
  0x12   :  { %23 = vsyncpa [#allocation4], 0 }
  0x13   :  { %25 = vsyncpa [#allocation4 + $0x1], 0  ;;  %s2681_s29 = smov 0   ;;  %s2683_s30 = smov 0  }
  0x14   :  { %s2685_s15 = smov 0   ;;  %s2687_s16 = smov 0  }
  0x15   :  { %s2689_s17 = smov 0   ;;  %s2691_s18 = smov 0  }
  0x16   :  { %s2693_s19 = smov 0   ;;  %s2695_s20 = smov 0  }
  0x17   :  { %s2697_s21 = smov 0   ;;  %s2699_s22 = smov 0  }
  0x18   :  { %s2701_s23 = smov 0  }
  0x19 LB: > { %3339 = sst [smem:[#allocation15_spill]] %s2549_s30  ;;  %p3304_p0 = scmp.ne.s32.totalorder %s2565_s18, %s2561_s17  ;;  %s2585_s23 = sphi %s2701_s23, %s31_s23   ;;  %s2581_s22 = sphi %s2699_s22, %s3409_s22   ;;  %s2577_s21 = sphi %s2697_s21, %s3408_s21   ;;  %s2573_s20 = sphi %s2695_s20, %s3407_s20   ;;  %s2569_s19 = sphi %s2693_s19, %s3406_s19   ;;  %s2565_s18 = sphi %s2691_s18, %s3405_s18   ;;  %s2561_s17 = sphi %s2689_s17, %s3411_s17   ;;  %s2557_s16 = sphi %s2687_s16, %s3410_s16   ;;  %s2553_s15 = sphi %s2685_s15, %s3403_s15   ;;  %s2549_s30 = sphi %s2683_s30, %s3402_s30   ;;  %s2545_s29 = sphi %s2681_s29, %s3401_s29  }
  0x1a   : > { %3340 = sst [smem:[#allocation16_spill]] %s2553_s15  ;;  %p58_p1 = scmp.eq.s32.totalorder %s2585_s23, 0 }
  0x1b   : > { %3341 = sst [smem:[#allocation17_spill]] %s2557_s16  ;;  %p208_p2 = scmp.ne.s32.totalorder %s2553_s15, %s2549_s30 }
  0x1c   : > { %3342 = sst [smem:[#allocation18_spill]] %s2565_s18  ;;  %p59_p3 = por %p58_p1, %p3304_p0 }
  0x1d   : > { %3343 = sst [smem:[#allocation19_spill]] %s2573_s20  ;;  %p2174_p4 = scmp.lt.s32.totalorder %s2585_s23, 4 }
  0x1e   : > { %3344 = sst [smem:[#allocation20_spill]] %s2577_s21  ;;  %p210_p5 = por %p208_p2, %p58_p1 }
  0x1f   : > { %3345 = sst [smem:[#allocation21_spill]] %s2581_s22  ;;  %s457_s26 = sand.u32 1, %s2585_s23  }
  0x20   : > { %3346 = sst [smem:[#allocation22_spill]] %s2585_s23  ;;  %s459_s27 = sand.u32 1, %s2565_s18  }
  0x21   : > { %s1946_s28 = sshll.u32 %s459_s27, 3  ;;  %s1947_s14 = sshll.u32 %s2581_s22, 7 }
  0x22   : > { %s3347_s0 = sld [smem:[#allocation28_spill]]  ;;  %s461_s25 = scalar_lea.vmem [#allocation2], %s1946_s28 }
  0x23   : > { %s468_s24 = sshll.u32 %s461_s25, 4  ;;  %p2755_p6 = pnand %p2174_p4, %p59_p3  ;;  %s2759_s24 = int_to_ptr.vmem [resolvable:$true] %s468_s24 }
  0x24   : > { %p2761_p7 = pnand %p2174_p4, %p210_p5  ;;  %s2765_s13 = scalar_lea.sflag [#allocation3], %s457_s26 }
  0x25   : > { %p2309_p9 = pneg %p2755_p6 }
  0x26   : > { %s3349_s27 = scalar_select %p2761_p7, 1, 0 }
  0x28   : > { %s2753_s12 = scalar_lea.hbm %s3347_s0, %s1947_s14  ;;  %s2312_s28 = scalar_lea.hbm %s3347_s0, 256 }
  0x29   : > { %s2307_s14 = scalar_lea.hbm %s2753_s12, 128  ;;  %p2313_p12 = scmp.lt.u32.totalorder %s2753_s12, %s3347_s0 }
  0x2a   : > { %p2308_p8 = scmp.ne.s32.totalorder %s2753_s12, %s2307_s14  ;;  %p2314_p13 = scmp.lt.u32.totalorder %s2312_s28, %s2307_s14 }
  0x2b   : > { %p2316_p2 = scmp.lt.u32.totalorder %s2307_s14, %s2753_s12 }
  0x2c   : > { %p2310_p10 = pnand %p2309_p9, %p2308_p8  ;;  %p2315_p1 = por %p2314_p13, %p2313_p12 }
  0x2e   : > { %p2311_p11 = pneg %p2310_p10  ;;  %p2317_p3 = por %p2316_p2, %p2315_p1 }
  0x30   : > { %p2318_p4 = pnand %p2317_p3, %p2311_p11 }
  0x32   : > { %2321 = shalt.err (!%p2318_p4)
}
  0x33   : > { %s2322_s26 = scalar_lea.vmem %s2759_s24, 128  ;;  %s2587_s20 = smov [#allocation2]  }
  0x34   : > { %p2323_p5 = scmp.ne.s32.totalorder %s2759_s24, %s2322_s26  ;;  %s2327_s25 = sshll.u32 %s2587_s20, 4  ;;  %s2328_s25 = int_to_ptr.vmem [resolvable:$false] %s2327_s25 }
  0x35   : > { %s2329_s8 = scalar_lea.vmem %s2328_s25, 256  ;;  %p2330_p0 = scmp.lt.s32.totalorder %s2759_s24, %s2328_s25 }
  0x36   : > { %p2325_p8 = pnand %p2323_p5, %p2309_p9  ;;  %p2331_p12 = scmp.lt.s32.totalorder %s2329_s8, %s2322_s26 }
  0x38   : > { %p2326_p10 = pneg %p2325_p8  ;;  %p2332_p13 = por %p2331_p12, %p2330_p0 }
  0x3a   : > { %p2333_p1 = pnand %p2332_p13, %p2326_p10 }
  0x3c   : > { %2336 = shalt.err (!%p2333_p1)
}
  0x3d   : > { %2159 = dma.hbm_to_vmem [thread:$0]  (!%p2755_p6), %s2753_s12, 128, %s2759_s24, %s2765_s13  }
  0x3e   : > { %s40_s11 = sadd.s32 1, %s2577_s21  ;;  %s201_s14 = sadd.s32 1, %s2553_s15 }
  0x3f   : > { %p41_p0 = scmp.ge.s32.totalorder %s40_s11, 2  ;;  %s2796_s28 = sand.u32 1, %s2553_s15  }
  0x40   : > { %s2799_s10 = sshll.u32 %s2577_s21, 4  ;;  %s3351_s26 = sadd.s32 1, %s2581_s22 }
  0x41   : > { %s3413_s11 = smov (%p41_p0, %s40_s11), 0  ;;  %s3415_s26 = smov (!%p41_p0, %s3351_s26), %s2581_s22 }
  0x42   : > { %3350 = sst [smem:[#allocation23_spill]] %s3413_s11  ;;  %s198_s20 = ssub.s32 %s2577_s21, %s3413_s11 }
  0x43   : > { %s3352_s6 = sld [smem:[#allocation33_spill]]  ;;  %p45_p6 = scmp.ge.s32.totalorder %s3415_s26, 2 }
  0x44   : > { %p199_p9 = scmp.eq.s32.totalorder %s198_s20, 0  ;;  %s506_s8 = scalar_lea.vmem [#allocation7], %s2796_s28 }
  0x45   : > { %s513_s0 = sshll.u32 %s506_s8, 4  ;;  %s3417_s26 = smov (%p45_p6, %s3415_s26), 0  ;;  %s2822_s0 = int_to_ptr.vmem [resolvable:$true] %s513_s0 }
  0x46   : > { %3353 = sst [smem:[#allocation24_spill]] %s3417_s26  ;;  %s47_s4 = ssub.s32 %s2581_s22, %s3417_s26 }
  0x47   : > { %s2818_s5 = scalar_select %p199_p9, %s2553_s15, %s201_s14  }
  0x48   : > { %p2824_p11 = scmp.eq.s32.totalorder %s47_s4, 0  ;;  %s3356_s7 = sld [smem:[#allocation34_spill]] }
  0x49   : > { %s2812_s24 = scalar_lea.hbm %s3352_s6, %s2799_s10  ;;  %3354 = sst [smem:[#allocation25_spill]] %s2818_s5 }
  0x4a   : > { %s3355_s25 = scalar_select %p2824_p11, 1, 0 }
  0x4b   : > { %s2337_s20 = scalar_lea.hbm %s2812_s24, 16  ;;  %p2838_p3 = pneg %p2761_p7 }
  0x4c   : > { %p2338_p2 = scmp.ne.s32.totalorder %s2812_s24, %s2337_s20  ;;  %s2342_s26 = scalar_lea.hbm %s3352_s6, 32 }
  0x4d   : > { %p2343_p8 = scmp.lt.u32.totalorder %s2812_s24, %s3352_s6  ;;  %p2344_p10 = scmp.lt.u32.totalorder %s2342_s26, %s2337_s20 }
  0x4e   : > { %s2832_s21 = scalar_lea.hbm %s3356_s7, %s2799_s10  ;;  %p2340_p4 = pnand %p2838_p3, %p2338_p2 }
  0x4f   : > { %p2345_p12 = por %p2344_p10, %p2343_p8  ;;  %p2346_p13 = scmp.lt.u32.totalorder %s2337_s20, %s2812_s24 }
  0x50   : > { %p2341_p5 = pneg %p2340_p4 }
  0x51   : > { %p2347_p1 = por %p2346_p13, %p2345_p12 }
  0x53   : > { %p2348_p0 = pnand %p2347_p1, %p2341_p5 }
  0x55   : > { %2351 = shalt.err (!%p2348_p0)
}
  0x56   : > { %s2352_s11 = scalar_lea.vmem %s2822_s0, 16  ;;  %s2588_s12 = smov [#allocation7]  }
  0x57   : > { %p2353_p6 = scmp.ne.s32.totalorder %s2822_s0, %s2352_s11  ;;  %s2357_s4 = sshll.u32 %s2588_s12, 4  ;;  %s2358_s4 = int_to_ptr.vmem [resolvable:$false] %s2357_s4 }
  0x58   : > { %s2359_s5 = scalar_lea.vmem %s2358_s4, 32  ;;  %p2360_p4 = scmp.lt.s32.totalorder %s2822_s0, %s2358_s4 }
  0x59   : > { %p2355_p9 = pnand %p2353_p6, %p2838_p3  ;;  %p2361_p11 = scmp.lt.s32.totalorder %s2359_s5, %s2352_s11 }
  0x5b   : > { %p2356_p2 = pneg %p2355_p9  ;;  %p2362_p8 = por %p2361_p11, %p2360_p4 }
  0x5d   : > { %p2363_p10 = pnand %p2362_p8, %p2356_p2 }
  0x5f   : > { %2366 = shalt.err (!%p2363_p10)
}
  0x60   : > { %2162 = dma.hbm_to_vmem [thread:$0]  (!%p2761_p7), %s2812_s24, 16, %s2822_s0, %s2765_s13  }
  0x61   : > { %s3358_s22 = sadd.s32 1, %s2565_s18  ;;  %p3359_p5 = scmp.ne.s32.totalorder %s3355_s25, 0 }
  0x62   : > { %s523_s20 = scalar_lea.vmem [#allocation8], %s2796_s28  ;;  %s2367_s11 = scalar_lea.hbm %s2832_s21, 16 }
  0x63   : > { %s2867_s26 = scalar_select %p3359_p5, %s2565_s18, %s3358_s22  }
  0x64   : > { %s530_s14 = sshll.u32 %s523_s20, 4  ;;  %p2368_p11 = scmp.ne.s32.totalorder %s2832_s21, %s2367_s11  ;;  %s531_s14 = int_to_ptr.vmem [resolvable:$true] %s530_s14 }
  0x65   : > { %3360 = sst [smem:[#allocation26_spill]] %s2867_s26  ;;  %s2372_s5 = scalar_lea.hbm %s3356_s7, 32 }
  0x66   : > { %p2370_p12 = pnand %p2368_p11, %p2838_p3  ;;  %p2373_p1 = scmp.lt.u32.totalorder %s2832_s21, %s3356_s7 }
  0x67   : > { %p2374_p0 = scmp.lt.u32.totalorder %s2372_s5, %s2367_s11  ;;  %p2376_p9 = scmp.lt.u32.totalorder %s2367_s11, %s2832_s21 }
  0x68   : > { %p2371_p13 = pneg %p2370_p12 }
  0x69   : > { %p2375_p6 = por %p2374_p0, %p2373_p1 }
  0x6b   : > { %p2377_p2 = por %p2376_p9, %p2375_p6 }
  0x6d   : > { %p2378_p4 = pnand %p2377_p2, %p2371_p13 }
  0x6f   : > { %2381 = shalt.err (!%p2378_p4)
}
  0x70   : > { %s2382_s0 = scalar_lea.vmem %s531_s14, 16  ;;  %s2589_s24 = smov [#allocation8]  }
  0x71   : > { %p2383_p8 = scmp.ne.s32.totalorder %s531_s14, %s2382_s0  ;;  %s2387_s25 = sshll.u32 %s2589_s24, 4  ;;  %s2388_s25 = int_to_ptr.vmem [resolvable:$false] %s2387_s25 }
  0x72   : > { %s2389_s22 = scalar_lea.vmem %s2388_s25, 32  ;;  %p2390_p11 = scmp.lt.s32.totalorder %s531_s14, %s2388_s25 }
  0x73   : > { %p2385_p10 = pnand %p2383_p8, %p2838_p3  ;;  %p2391_p12 = scmp.lt.s32.totalorder %s2389_s22, %s2382_s0 }
  0x75   : > { %p2386_p5 = pneg %p2385_p10  ;;  %p2392_p7 = por %p2391_p12, %p2390_p11 }
  0x77   : > { %p2393_p0 = pnand %p2392_p7, %p2386_p5 }
  0x79   : > { %2396 = shalt.err (!%p2393_p0)
}
  0x7a   : > { %p3361_p1 = scmp.ne.s32.totalorder %s3349_s27, 0  ;;  %s2889_s6 = sadd.s32 4294967295, %s2585_s23  }
  0x7b   : > { %s1942_s15 = sadd.s32 4294967294, %s2585_s23   ;;  %p63_p7 = scmp.ne.s32.totalorder %s2561_s17, %s2557_s16 }
  0x7c   : > { %2165 = dma.hbm_to_vmem [thread:$0]  (!%p3361_p1), %s2832_s21, 16, %s531_s14, %s2765_s13  }
  0x7d   : > { %p3314_p13 = scmp.eq.s32.totalorder %s2889_s6, 0  ;;  %p214_p6 = scmp.ne.s32.totalorder %s2549_s30, %s2545_s29 }
  0x7e   : > { %p420_p9 = scmp.eq.s32.totalorder %s2889_s6, 3  ;;  %p426_p4 = scmp.eq.s32.totalorder %s1942_s15, 3 }
  0x7f   : > { %p2900_p2 = por %p3314_p13, %p63_p7  ;;  %p2906_p8 = por %p214_p6, %p3314_p13 }
  0x80   : > { %p3364_p10 = scmp.ne.s32.totalorder %s2565_s18, %s2561_s17  ;;  %p2917_p11 = por %p426_p4, %p63_p7 }
  0x81   : > { %s3362_s20 = scalar_select %p2900_p2, 1, 0 }
  0x82   : > { %s3363_s21 = scalar_select %p2906_p8, 1, 0 }
  0x83   : > { %p2913_p5 = por %p420_p9, %p3364_p10  ;;  %p1943_p12 = scmp.ge.s32.totalorder %s2585_s23, 1 }
  0x84   : > { %s3366_s29 = scalar_select %p2917_p11, 1, 0 }
  0x85   : > { %s3365_s14 = scalar_select %p2913_p5, 1, 0 }
  0x86   : > { %3367 = sst [smem:[#allocation27_spill]] %s3366_s29  ;;  %p433_p0 = scmp.lt.s32.totalorder %s2585_s23, 5 }
  0x87   : > { %s2590_s12 = smov [#allocation5]   ;;  %s3369_s9 = sld [smem:[#allocation36_spill]] }
  0x88   : > { %p2923_p2 = pnand %p1943_p12, %p433_p0  ;;  %s446_s4 = sshll.u32 %s2590_s12, 4  ;;  %s2938_s4 = int_to_ptr.vmem [resolvable:$true] %s446_s4 }
  0x89   : > { %s548_s25 = scalar_lea.vmem [#allocation9], %s2796_s28 }
  0x8a   : > { %s3368_s11 = scalar_select %p2923_p2, 1, 0 }
  0x8b   : > { %p2152_p7 = pneg %p2923_p2  ;;  %s555_s22 = sshll.u32 %s548_s25, 4  ;;  %s2936_s22 = int_to_ptr.vmem [resolvable:$true] %s555_s22 }
  0x8d   : > { %s2931_s24 = scalar_lea.hbm %s3369_s9, %s2799_s10  ;;  %p2942_p6 = pnand %p2152_p7, %p3314_p13 }
  0x8e   : > { %s2397_s12 = scalar_lea.hbm %s2931_s24, 16  ;;  %s2402_s0 = scalar_lea.hbm %s3369_s9, 32 }
  0x8f   : > { %s3370_s15 = scalar_select %p2942_p6, 1, 0 }
  0x90   : > { %p2398_p9 = scmp.ne.s32.totalorder %s2931_s24, %s2397_s12  ;;  %p2403_p12 = scmp.lt.u32.totalorder %s2931_s24, %s3369_s9 }
  0x91   : > { %p2404_p0 = scmp.lt.u32.totalorder %s2402_s0, %s2397_s12  ;;  %p2406_p5 = scmp.lt.u32.totalorder %s2397_s12, %s2931_s24 }
  0x92   : > { %p2400_p4 = pnand %p2398_p9, %p2838_p3 }
  0x93   : > { %p2405_p11 = por %p2404_p0, %p2403_p12 }
  0x94   : > { %p2401_p10 = pneg %p2400_p4 }
  0x95   : > { %p2407_p7 = por %p2406_p5, %p2405_p11 }
  0x97   : > { %p2408_p13 = pnand %p2407_p7, %p2401_p10 }
  0x99   : > { %2411 = shalt.err (!%p2408_p13)
}
  0x9a   : > { %s2412_s7 = scalar_lea.vmem %s2936_s22, 16  ;;  %s2591_s10 = smov [#allocation9]  }
  0x9b   : > { %p2413_p9 = scmp.ne.s32.totalorder %s2936_s22, %s2412_s7  ;;  %s2417_s5 = sshll.u32 %s2591_s10, 4  ;;  %s2418_s5 = int_to_ptr.vmem [resolvable:$false] %s2417_s5 }
  0x9c   : > { %s2419_s28 = scalar_lea.vmem %s2418_s5, 32  ;;  %p2420_p2 = scmp.lt.s32.totalorder %s2936_s22, %s2418_s5 }
  0x9d   : > { %p2415_p4 = pnand %p2413_p9, %p2838_p3  ;;  %p2421_p6 = scmp.lt.s32.totalorder %s2419_s28, %s2412_s7 }
  0x9f   : > { %p2416_p8 = pneg %p2415_p4  ;;  %p2422_p12 = por %p2421_p6, %p2420_p2 }
  0xa1   : > { %p2423_p0 = pnand %p2422_p12, %p2416_p8 }
  0xa3   : > { %2426 = shalt.err (!%p2423_p0)
}
  0xa4   : > { %2168 = dma.hbm_to_vmem [thread:$0]  (!%p3361_p1), %s2931_s24, 16, %s2936_s22, %s2765_s13  }
  0xa5   : > { %s3371_s1 = sld [smem:[#allocation29_spill]]  ;;  %p3372_p13 = scmp.ne.s32.totalorder %s3370_s15, 0 }
  0xa7   : > { %p2429_p5 = pneg %p3372_p13 }
  0xab   : > { %s2427_s0 = scalar_lea.hbm %s3371_s1, 128 }
  0xac   : > { %p2428_p3 = scmp.ne.s32.totalorder %s3371_s1, %s2427_s0  ;;  %p2434_p11 = scmp.lt.u32.totalorder %s2427_s0, %s3371_s1 }
  0xae   : > { %p2430_p2 = pnand %p2429_p5, %p2428_p3 }
  0xb0   : > { %p2431_p8 = pneg %p2430_p2 }
  0xb2   : > { %p2436_p6 = pnand %p2434_p11, %p2431_p8 }
  0xb4   : > { %2439 = shalt.err (!%p2436_p6)
}
  0xb5   : > { %s2440_s27 = scalar_lea.vmem %s2938_s4, 128  ;;  %p2448_p9 = scmp.lt.s32.totalorder %s2938_s4, %s2938_s4 }
  0xb6   : > { %p2441_p1 = scmp.ne.s32.totalorder %s2938_s4, %s2440_s27  ;;  %p2449_p4 = scmp.lt.s32.totalorder %s2440_s27, %s2440_s27 }
  0xb8   : > { %p2443_p10 = pnand %p2441_p1, %p2429_p5  ;;  %p2450_p12 = por %p2449_p4, %p2448_p9 }
  0xba   : > { %p2444_p7 = pneg %p2443_p10 }
  0xbc   : > { %p2451_p0 = pnand %p2450_p12, %p2444_p7 }
  0xbe   : > { %2454 = shalt.err (!%p2451_p0)
}
  0xbf   : > { %2155 = dma.hbm_to_vmem [thread:$0]  (!%p3372_p13), %s3371_s1, 128, %s2938_s4, [#allocation6]  }
  0xc0   : > { %p3373_p3 = scmp.ne.s32.totalorder %s3368_s11, 0 }
  0xc1   : > { %s592_s22 = sand.u32 (!%p3373_p3), 1, %s2889_s6   ;;  %s3318_s28 = sand.u32 (!%p3373_p3), 1, %s2561_s17  }
  0xc2   : > { %590 = sbr.rel (%p3373_p3) target bundleno = 3911 (0xf47), region = 76  ;;  %s2995_s12 = sshll.u32 (!%p3373_p3), %s3318_s28, 3 }
  0xc3   : > { %s593_s8 = scalar_lea.sflag (!%p3373_p3), [#allocation3], %s592_s22  ;;  %s596_s15 = scalar_lea.vmem (!%p3373_p3), [#allocation2], %s2995_s12 }
  0xc4   : > { %p3374_p5 = scmp.ne.s32.totalorder (!%p3373_p3), %s3362_s20, 0 }
  0xc9   : > { %2528 = dma.done.wait (%p3374_p5), %s593_s8, 128  }
  0xca   : > { %2530 = vsyncadd (%p3374_p5), %s593_s8, 4294967168  ;;  %p3375_p13 = scmp.eq.s32.totalorder %s2889_s6, 0 }
  0xcc   : > { %2532 = dma.done.wait (%p3375_p13), [#allocation6], 128   ;;  %p3376_p2 = pmov %p3375_p13 }
  0xcd   : > { %s3007_s11 = sand.u32 1, %s2549_s30   ;;  %p3377_p8 = scmp.ne.s32.totalorder %s3363_s21, 0 }
  0xce   : > { %2534 = vsyncadd (%p3376_p2), [#allocation6], 4294967168 }
  0xcf   : > { %2536 = dma.done.wait (%p3377_p8), %s593_s8, 48  }
  0xd0   : > { %2538 = vsyncadd (%p3377_p8), %s593_s8, 4294967248  ;;  %p716_p11 = scmp.lt.s32.totalorder %s2569_s19, 1  ;;  %s3378_s2 = sld [smem:[#allocation30_spill]] }
  0xd1   : > { %s3379_s24 = sld [smem:[#allocation31_spill]]  ;;  %s3381_s18 = sld [smem:[#allocation35_spill]] }
  0xd2   : > { %s3016_s20 = scalar_select %p716_p11, %s2569_s19, 1 }
  0xd3   : > { %s3382_s29 = sld [smem:[#allocation38_spill]]  ;;  %s3383_s16 = sld [smem:[#allocation37_spill]] }
  0xd4   : > { %s1999_s6 = sshll.u32 %s3016_s20, 4  ;;  %s2002_s0 = sshll.u32 %s3016_s20, 5 }
  0xd5   : > { %s3384_s23 = sld [smem:[#allocation39_spill]]  ;;  %s3385_s1 = sld [smem:[#allocation40_spill]] }
  0xd6   : > { %s720_s5 = scalar_lea.vmem %s3378_s2, %s1999_s6  ;;  %s624_s26 = scalar_lea.vmem [#allocation9], %s3007_s11 }
  0xd7   : > { %s3029_s22 = scalar_lea.vmem %s3379_s24, %s1999_s6  ;;  %s3038_s30 = scalar_lea.vmem %s3381_s18, %s1999_s6 }
  0xd8   : > { %s616_s18 = scalar_lea.vmem [#allocation8], %s3007_s11  ;;  %s3061_s6 = scalar_lea.vmem [#allocation10], %s2995_s12 }
  0xd9   : > { %s744_s10 = scalar_lea.vmem %s3382_s29, %s3016_s20  ;;  %s3048_s27 = scalar_lea.vmem %s3383_s16, %s2002_s0 }
  0xda   : > { %p1963_p6 = scmp.ne.s32.totalorder %s2569_s19, 0 }
  0xdb   : > { %s747_s28 = scalar_lea.vmem %s3384_s23, %s3016_s20  ;;  %s750_s9 = scalar_lea.vmem %s3385_s1, %s3016_s20  ;;  %v756_v0 = vld [vmem:[%s596_s15] sm:$0xff] (!%p1963_p6)  ;;  %v757_v1 = vld [vmem:[#allocation5] sm:$0xff] (!%p1963_p6)  ;;  %vm759_vm0 = vcmask (!%p1963_p6), 261120  }
  0xdc   : > { %755 = sbr.rel (%p1963_p6) target bundleno = 227 (0xe3), region = 100  ;;  %v758_v2 = vadd.f32 (!%p1963_p6), %v757_v1, %v756_v0 }
  0xde   : > { %760 = vst.msk [vmem:[%s3061_s6] sm:$0xff] (!%p1963_p6), %vm759_vm0, %v758_v2 }
  0xe3 PF: > { %v2279_v3 = vld [vmem:[%s720_s5] sm:$0xff]   ;;  %v2592_v4 = vmov 0.0   ;;  %v2280_v5 = vld [vmem:[%s720_s5 + $0x8] sm:$0xff]   ;;  %vm2593_vm1 = vmmov 0   ;;  %vm786_vm2 = vcmask 261120   ;;  %s3386_s16 = scalar_lea.vmem %s3291_s3, %s3016_s20  ;;  %s2594_s19 = smov 120  }
  0xe4   : > { %2038 = vmatprep.subr.bf16.mxu1 %v2592_v4  ;;  %2052 = vmatprep.subr.bf16.mxu0 %v2592_v4  ;;  %v1964_v8 = vld [vmem:[%s3386_s16] ss:$0 sm:$0xff]  ;;  %s2595_s23 = smov 96   ;;  %s2596_s29 = smov 88   ;;  %vm838_vm3 = vcmask 64512   ;;  %vm903_vm4 = vcmask 1043456  }
  0xe5   : > { %2039 = vmatpush3.bf16.msra.mxu1 %v2279_v3  ;;  %2042 = vmatprep.mubr.msk.bf16.mxu1 %vm2593_vm1, %v2592_v4  ;;  %v3070_v6 = vld [vmem:[%s3061_s6] sm:$0xff]  ;;  %s2597_s12 = smov 64   ;;  %s2598_s15 = smov 56   ;;  %vm1617_vm5 = vcmask 523264  }
  0xe6   : > { %2040 = vmatprep.subr.bf16.mxu1 %v2592_v4  ;;  %2054 = vmatprep.mubr.msk.bf16.mxu0 %vm2593_vm1, %v2592_v4  ;;  %v762_v7 = vpack.c.bf16 %v3070_v6, %v3070_v6  ;;  %s2599_s21 = smov 112   ;;  %s2600_s5 = smov 80   ;;  %v831_v54 = vld [vmem:[%s3029_s22] sm:$0xf]  ;;  %v832_v56 = vld [vmem:[%s3029_s22 + $0x4] sm:$0xf] }
  0xe7   : > { %v1110_v55 = vsel %vm903_vm4, %v831_v54, 0  ;;  %v1064_v57 = vsel %vm903_vm4, %v832_v56, 0  ;;  %s2601_s0 = smov 72   ;;  %s2602_s25 = smov 104  }
  0xe8   : > { %s2603_s7 = smov 48   ;;  %s2604_s13 = smov 40  }
  0xe9   : > { %2041 = vmatpush3.bf16.msra.mxu1 %v2280_v5  ;;  %s3387_s4 = sld [smem:[#allocation32_spill]]  ;;  %p3396_p10 = scmp.ne.s32.totalorder %s3365_s14, 0 }
  0xea   : > { %2046 = vmatprep.subr.bf16.mxu1 %v2592_v4 }
  0xec   : > { %2043 = vmatmul.mubr.msk.bf16.vlgmr.msra.gmra.mrb[0].mxu1 %vm786_vm2, %v762_v7 }
  0xed   : > { %2048 = vmatprep.mubr.msk.bf16.mxu1 %vm2593_vm1, %v2592_v4 }
  0xef   : > { %s3388_s8 = scalar_lea.vmem %s3387_s4, %s3016_s20 }
 0x1bf   : > { %v824_v9 = vpop.f32.mrb[0].mxu1 }
 0x1c0   : > { %v825_v10 = vadd.f32 %v1964_v8, %v824_v9  ;;  %v2044_v11 = vpop.f32.mrb[1].mxu1 }
 0x1c1   : > { %v827_v12 = vpop.f32.mrb[2].mxu1 }
 0x1c2   : > { %v3086_v13 = vpack.c.bf16 %v825_v10, %v825_v10  ;;  %v2045_v14 = vpop.f32.mrb[3].mxu1 }
 0x1c4   : > { %948 = vrot.lane.b32.xlu1 %v3086_v13, %s2594_s19  ;;  %836 = vrot.lane.b32.xlu0 %v3086_v13, %s2595_s23 }
 0x1c8   : > { %950 = vrot.lane.b32.xlu0 %v3086_v13, %s2596_s29 }
 0x236   : > { %v837_v15 = vpop.permute.xlu0 %836  ;;  %v949_v19 = vpop.permute.xlu1 %948 }
 0x237   : > { %v843_v16 = vsel %vm838_vm3, %v837_v15, 0 }
 0x238   : > { %2047 = vmatpush3.bf16.xpose.msra.mxu1 %v843_v16 }
 0x239   : > { %2058 = vmatprep.subr.bf16.mxu1 %v2592_v4 }
 0x23a   : > { %v951_v17 = vpop.permute.xlu0 %950 }
 0x23b   : > { %v956_v18 = vsel %vm838_vm3, %v951_v17, 0 }
 0x23f   : > { %2049 = vmatmul.mubr.msk.bf16.vlgmr.msra.gmra.mrb[4].mxu1 %vm838_vm3, %v3086_v13 }
 0x240   : > { %2059 = vmatpush3.bf16.xpose.msra.mxu1 %v956_v18  ;;  %2060 = vmatprep.mubr.msk.bf16.mxu1 %vm2593_vm1, %v2592_v4 }
 0x241   : > { %2070 = vmatprep.subr.bf16.mxu1 %v2592_v4 }
 0x247   : > { %2061 = vmatmul.mubr.msk.bf16.vlgmr.msra.gmra.mrb[8].mxu1 %vm838_vm3, %v949_v19 }
 0x248   : > { %2072 = vmatprep.mubr.msk.bf16.mxu1 %vm2593_vm1, %v2592_v4  ;;  %2071 = vmatpush3.bf16.msra.mxu1 %v1064_v57 }
 0x249   : > { %2082 = vmatprep.subr.bf16.mxu1 %v2592_v4 }
 0x312   : > { %v879_v20 = vpop.f32.mrb[4].mxu1 }
 0x313   : > { %v885_v21 = vmul.f32 0.35355338, %v879_v20  ;;  %v2050_v22 = vpop.f32.mrb[5].mxu1 }
 0x314   : > { %v882_v23 = vpop.f32.mrb[6].mxu1 }
 0x315   : > { %v2051_v24 = vpop.f32.mrb[7].mxu1  ;;  %v886_v25 = vsel %vm838_vm3, %v885_v21, -inf }
 0x316   : > { %887 = vmax.xlane.f32.xlu1 %v886_v25 }
 0x31a   : > { %v992_v26 = vpop.f32.mrb[8].mxu1 }
 0x31b   : > { %v998_v27 = vmul.f32 0.35355338, %v992_v26  ;;  %v2062_v28 = vpop.f32.mrb[9].mxu1 }
 0x31c   : > { %v995_v29 = vpop.f32.mrb[10].mxu1 }
 0x31d   : > { %v2063_v30 = vpop.f32.mrb[11].mxu1  ;;  %v999_v31 = vsel %vm838_vm3, %v998_v27, -inf }
 0x31e   : > { %1000 = vmax.xlane.f32.xlu0 %v999_v31 }
 0x3a3   : > { %v888_v32 = vpop.xlane.xlu1 %887 }
 0x3a4   : > { %v889_v33 = vsub.f32 %v885_v21, %v888_v32 }
 0x3a6   : > { %v890_v34 = vmul.f32 1.442695, %v889_v33 }
 0x3a8   : > { %2287 = vpow2.f32 %v890_v34 }
 0x3ab   : > { %v1001_v35 = vpop.xlane.xlu0 %1000 }
 0x3ac   : > { %v1002_v36 = vsub.f32 %v998_v27, %v1001_v35 }
 0x3ae   : > { %v1003_v37 = vmul.f32 1.442695, %v1002_v36 }
 0x3b0   : > { %2289 = vpow2.f32 %v1003_v37 }
 0x3b2   : > { %v2288_v38 = vpop.eup %2287 }
 0x3b3   : > { %v892_v39 = vsel %vm838_vm3, %v2288_v38, 0.0 }
 0x3b4   : > { %893 = vadd.xlane.f32.xlu0 %v892_v39  ;;  %v833_v39 = vld [vmem:[%s3029_s22 + $0x8] sm:$0xf] }
 0x3ba   : > { %v2290_v40 = vpop.eup %2289 }
 0x3bb   : > { %v1005_v41 = vsel %vm838_vm3, %v2290_v40, 0.0 }
 0x3bc   : > { %1006 = vadd.xlane.f32.xlu1 %v1005_v41 }
 0x3ca   : > { %898 = vrot.lane.b32.xlu0 %v3086_v13, %s2597_s12  ;;  %s1706_s12 = sshll.u32 %s3061_s6, 4  ;;  %s3224_s12 = int_to_ptr.vmem [resolvable:$true] %s1706_s12 }
 0x3cb   : > { %s2455_s20 = scalar_lea.vmem %s3224_s12, 128 }
 0x3cc   : > { %p2456_p1 = scmp.ne.s32.totalorder %s3224_s12, %s2455_s20 }
 0x3cd   : > { %1011 = vrot.lane.b32.xlu1 %v3086_v13, %s2598_s15 }
 0x3ce   : > { %1152 = vrot.lane.b32.xlu0 %v3086_v13, %s2599_s21  ;;  %p2457_p7 = pnand %p2456_p1, %p3396_p10 }
 0x3d0   : > { %p2458_p9 = pneg %p2457_p7 }
 0x3d1   : > { %1154 = vrot.lane.b32.xlu1 %v3086_v13, %s2600_s5  ;;  %s3394_s5 = sld [smem:[#allocation41_spill]] }
 0x441   : > { %v894_v42 = vpop.xlane.xlu0 %893 }
 0x442   : > { %2291 = vrcp.f32 %v894_v42 }
 0x445   : > { %v899_v43 = vpop.permute.xlu0 %898 }
 0x446   : > { %v905_v44 = vsel %vm903_vm4, %v899_v43, 0 }
 0x447   : > { %2053 = vmatpush3.bf16.msra.mxu0 %v905_v44 }
 0x448   : > { %2064 = vmatprep.subr.bf16.mxu0 %v2592_v4 }
 0x449   : > { %v1007_v45 = vpop.xlane.xlu1 %1006  ;;  %v1153_v8 = vpop.permute.xlu0 %1152 }
 0x44a   : > { %2293 = vrcp.f32 %v1007_v45 }
 0x44c   : > { %v2292_v46 = vpop.eup %2291 }
 0x44d   : > { %v896_v47 = vmul.f32 %v2292_v46, %v2288_v38  ;;  %v1012_v48 = vpop.permute.xlu1 %1011 }
 0x44e   : > { %v1017_v50 = vsel %vm903_vm4, %v1012_v48, 0 }
 0x44f   : > { %v897_v49 = vpack.c.bf16 %v896_v47, %v896_v47 }
 0x451   : > { %2055 = vmatmul.mubr.msk.bf16.vlgmr.msra.gmra.mrb[0].mxu0 %vm838_vm3, %v897_v49  ;;  %v1155_v63 = vpop.permute.xlu1 %1154 }
 0x452   : > { %2065 = vmatpush3.bf16.msra.mxu0 %v1017_v50  ;;  %2066 = vmatprep.mubr.msk.bf16.mxu0 %vm2593_vm1, %v2592_v4  ;;  %v1160_v5 = vsel %vm838_vm3, %v1155_v63, 0 }
 0x453   : > { %2076 = vmatprep.subr.bf16.mxu0 %v2592_v4 }
 0x454   : > { %v2294_v51 = vpop.eup %2293 }
 0x455   : > { %v1009_v52 = vmul.f32 %v2294_v51, %v2290_v40  ;;  %v1268_v40 = vsel %vm903_vm4, %v833_v39, 0 }
 0x457   : > { %v1010_v53 = vpack.c.bf16 %v1009_v52, %v1009_v52 }
 0x459   : > { %2067 = vmatmul.mubr.msk.bf16.vlgmr.msra.gmra.mrb[4].mxu0 %vm838_vm3, %v1010_v53 }
 0x45a   : > { %2078 = vmatprep.mubr.msk.bf16.mxu0 %vm2593_vm1, %v2592_v4  ;;  %2077 = vmatpush3.bf16.msra.mxu0 %v1110_v55 }
 0x45b   : > { %2088 = vmatprep.subr.bf16.mxu0 %v2592_v4 }
 0x524   : > { %v941_v58 = vpop.f32.mrb[0].mxu0 }
 0x525   : > { %v947_v59 = vpack.c.bf16 %v941_v58, %v941_v58  ;;  %v2056_v60 = vpop.f32.mrb[1].mxu0 }
 0x526   : > { %v944_v61 = vpop.f32.mrb[2].mxu0 }
 0x527   : > { %v2057_v62 = vpop.f32.mrb[3].mxu0  ;;  %2079 = vmatmul.mubr.msk.bf16.vlgmr.msra.gmra.mrb[8].mxu0 %vm838_vm3, %v947_v59  ;;  %v834_v59 = vld [vmem:[%s3029_s22 + $0xc] sm:$0xf] }
 0x528   : > { %2090 = vmatprep.mubr.msk.bf16.mxu0 %vm2593_vm1, %v2592_v4  ;;  %v1427_v60 = vsel %vm903_vm4, %v834_v59, 0 }
 0x52c   : > { %v1053_v0 = vpop.f32.mrb[4].mxu0 }
 0x52d   : > { %v1059_v1 = vpack.c.bf16 %v1053_v0, %v1053_v0  ;;  %v2068_v2 = vpop.f32.mrb[5].mxu0 }
 0x52e   : > { %v1056_v3 = vpop.f32.mrb[6].mxu0 }
 0x52f   : > { %v2069_v7 = vpop.f32.mrb[7].mxu0  ;;  %2073 = vmatmul.mubr.msk.bf16.vlgmr.msra.gmra.mrb[12].mxu1 %vm838_vm3, %v1059_v1 }
 0x530   : > { %2083 = vmatpush3.bf16.xpose.msra.mxu1 %v1160_v5  ;;  %2084 = vmatprep.mubr.msk.bf16.mxu1 %vm2593_vm1, %v2592_v4 }
 0x531   : > { %2094 = vmatprep.subr.bf16.mxu1 %v2592_v4 }
 0x537   : > { %2085 = vmatmul.mubr.msk.bf16.vlgmr.msra.gmra.mrb[16].mxu1 %vm838_vm3, %v1153_v8 }
 0x538   : > { %2096 = vmatprep.mubr.msk.bf16.mxu1 %vm2593_vm1, %v2592_v4  ;;  %2095 = vmatpush3.bf16.msra.mxu1 %v1268_v40  ;;  %v2285_v40 = vld [vmem:[%s3048_s27 + $0x10] sm:$0xff]  }
 0x539   : > { %2106 = vmatprep.subr.bf16.mxu1 %v2592_v4 }
 0x5fa   : > { %v1146_v9 = vpop.f32.mrb[8].mxu0 }
 0x5fb   : > { %v2080_v10 = vpop.f32.mrb[9].mxu0 }
 0x5fc   : > { %v1149_v11 = vpop.f32.mrb[10].mxu0 }
 0x5fd   : > { %v2081_v12 = vpop.f32.mrb[11].mxu0 }
 0x602   : > { %v1100_v14 = vpop.f32.mrb[12].mxu1 }
 0x603   : > { %v3137_v15 = vadd.f32 %v1146_v9, %v1100_v14  ;;  %v2074_v16 = vpop.f32.mrb[13].mxu1  ;;  %v1980_v14 = vld [vmem:[%s3388_s8] ss:$0 sm:$0xff] }
 0x604   : > { %v1103_v17 = vpop.f32.mrb[14].mxu1 }
 0x605   : > { %v2075_v18 = vpop.f32.mrb[15].mxu1 }
 0x60a   : > { %v1196_v19 = vpop.f32.mrb[16].mxu1 }
 0x60b   : > { %v1202_v20 = vmul.f32 0.35355338, %v1196_v19  ;;  %v2086_v21 = vpop.f32.mrb[17].mxu1 }
 0x60c   : > { %v1199_v22 = vpop.f32.mrb[18].mxu1 }
 0x60d   : > { %v2087_v23 = vpop.f32.mrb[19].mxu1  ;;  %v1203_v24 = vsel %vm838_vm3, %v1202_v20, -inf }
 0x60e   : > { %1204 = vmax.xlane.f32.xlu1 %v1203_v24 }
 0x61f   : > { %1313 = vrot.lane.b32.xlu1 %v3086_v13, %s2601_s0 }
 0x623   : > { %1311 = vrot.lane.b32.xlu1 %v3086_v13, %s2602_s25 }
 0x69b   : > { %v1205_v25 = vpop.xlane.xlu1 %1204 }
 0x69c   : > { %v1206_v26 = vsub.f32 %v1202_v20, %v1205_v25 }
 0x69e   : > { %v1207_v27 = vmul.f32 1.442695, %v1206_v26 }
 0x69f   : > { %v1314_v35 = vpop.permute.xlu1 %1313 }
 0x6a0   : > { %2295 = vpow2.f32 %v1207_v27  ;;  %v1319_v37 = vsel %vm838_vm3, %v1314_v35, 0  ;;  %v2281_v27 = vld [vmem:[%s3038_s30] sm:$0xff]  }
 0x6a3   : > { %v1312_v38 = vpop.permute.xlu1 %1311 }
 0x6aa   : > { %v2296_v28 = vpop.eup %2295 }
 0x6ab   : > { %v1209_v29 = vsel %vm838_vm3, %v2296_v28, 0.0 }
 0x6ac   : > { %1210 = vadd.xlane.f32.xlu0 %v1209_v29  ;;  %v2284_v29 = vld [vmem:[%s3048_s27 + $0x8] sm:$0xff]  }
 0x6c2   : > { %1215 = vrot.lane.b32.xlu0 %v3086_v13, %s2603_s7 }
 0x739   : > { %v1211_v30 = vpop.xlane.xlu0 %1210 }
 0x73a   : > { %2297 = vrcp.f32 %v1211_v30 }
 0x73d   : > { %v1216_v31 = vpop.permute.xlu0 %1215 }
 0x73e   : > { %v1221_v32 = vsel %vm903_vm4, %v1216_v31, 0 }
 0x73f   : > { %2089 = vmatpush3.bf16.msra.mxu0 %v1221_v32 }
 0x740   : > { %2100 = vmatprep.subr.bf16.mxu0 %v2592_v4 }
 0x744   : > { %v2298_v33 = vpop.eup %2297 }
 0x745   : > { %v1213_v34 = vmul.f32 %v2298_v33, %v2296_v28  ;;  %v2282_v28 = vld [vmem:[%s3038_s30 + $0x8] sm:$0xff]   ;;  %s3389_s30 = scalar_lea.vmem [#allocation7], %s3007_s11  ;;  %s3391_s11 = sld [smem:[#allocation19_spill]] }
 0x747   : > { %v1214_v36 = vpack.c.bf16 %v1213_v34, %v1213_v34  ;;  %v1981_v34 = vld [vmem:[%s3389_s30] ss:$0 sm:$0xff] }
 0x749   : > { %2091 = vmatmul.mubr.msk.bf16.vlgmr.msra.gmra.mrb[12].mxu0 %vm838_vm3, %v1214_v36  ;;  %v1982_v36 = vld [vmem:[%s616_s18] ss:$0 sm:$0xff] }
 0x74a   : > { %2101 = vmatpush3.bf16.xpose.msra.mxu0 %v1319_v37  ;;  %2102 = vmatprep.mubr.msk.bf16.mxu0 %vm2593_vm1, %v2592_v4 }
 0x74b   : > { %2112 = vmatprep.subr.bf16.mxu0 %v2592_v4  ;;  %s1996_s29 = sshll.u32 %s3391_s11, 7 }
 0x74c   : > { %s3222_s0 = scalar_lea.hbm %s3394_s5, %s1996_s29 }
 0x751   : > { %2103 = vmatmul.mubr.msk.bf16.vlgmr.msra.gmra.mrb[16].mxu0 %vm838_vm3, %v1312_v38 }
 0x752   : > { %2114 = vmatprep.mubr.msk.bf16.mxu0 %vm2593_vm1, %v2592_v4  ;;  %2113 = vmatpush3.bf16.msra.mxu0 %v1427_v60 }
 0x753   : > { %2126 = vmatprep.subr.bf16.mxu0 %v2592_v4 }
 0x81c   : > { %v1257_v41 = vpop.f32.mrb[12].mxu0 }
 0x81d   : > { %v1263_v42 = vpack.c.bf16 %v1257_v41, %v1257_v41  ;;  %v2092_v43 = vpop.f32.mrb[13].mxu0  ;;  %v2286_v41 = vld [vmem:[%s3048_s27 + $0x18] sm:$0xff]  }
 0x81e   : > { %v1260_v44 = vpop.f32.mrb[14].mxu0 }
 0x81f   : > { %v2093_v45 = vpop.f32.mrb[15].mxu0  ;;  %2097 = vmatmul.mubr.msk.bf16.vlgmr.msra.gmra.mrb[20].mxu1 %vm838_vm3, %v1263_v42  ;;  %v1983_v42 = vld [vmem:[%s624_s26] ss:$0 sm:$0xff] }
 0x820   : > { %2108 = vmatprep.mubr.msk.bf16.mxu1 %vm2593_vm1, %v2592_v4 }
 0x824   : > { %v1355_v46 = vpop.f32.mrb[16].mxu0 }
 0x825   : > { %v1361_v47 = vmul.f32 0.35355338, %v1355_v46  ;;  %v2104_v48 = vpop.f32.mrb[17].mxu0 }
 0x826   : > { %v1358_v49 = vpop.f32.mrb[18].mxu0 }
 0x827   : > { %v2105_v50 = vpop.f32.mrb[19].mxu0  ;;  %v1362_v51 = vsel %vm838_vm3, %v1361_v47, -inf }
 0x828   : > { %1363 = vmax.xlane.f32.xlu0 %v1362_v51  ;;  %v1987_v50 = vld [vmem:[%s744_s10] ss:$0 sm:$0xff] }
 0x83e   : > { %1374 = vrot.lane.b32.xlu0 %v3086_v13, %s2604_s13 }
 0x8b5   : > { %v1364_v52 = vpop.xlane.xlu0 %1363 }
 0x8b6   : > { %v1365_v53 = vsub.f32 %v1361_v47, %v1364_v52 }
 0x8b8   : > { %v1366_v54 = vmul.f32 1.442695, %v1365_v53 }
 0x8b9   : > { %v1375_v55 = vpop.permute.xlu0 %1374 }
 0x8ba   : > { %2299 = vpow2.f32 %v1366_v54  ;;  %v1380_v56 = vsel %vm903_vm4, %v1375_v55, 0 }
 0x8bb   : > { %2107 = vmatpush3.bf16.msra.mxu1 %v1380_v56 }
 0x8bc   : > { %2118 = vmatprep.subr.bf16.mxu1 %v2592_v4 }
 0x8c4   : > { %v2300_v57 = vpop.eup %2299 }
 0x8c5   : > { %v1368_v58 = vsel %vm838_vm3, %v2300_v57, 0.0 }
 0x8c6   : > { %1369 = vadd.xlane.f32.xlu1 %v1368_v58 }
 0x8f2   : > { %v1304_v13 = vpop.f32.mrb[20].mxu1 }
 0x8f3   : > { %v1310_v61 = vadd.f32 %v1304_v13, %v3137_v15  ;;  %v2098_v62 = vpop.f32.mrb[21].mxu1 }
 0x8f4   : > { %v1307_v63 = vpop.f32.mrb[22].mxu1 }
 0x8f5   : > { %v2099_v0 = vpop.f32.mrb[23].mxu1 }
 0x953   : > { %v1370_v1 = vpop.xlane.xlu1 %1369 }
 0x954   : > { %2301 = vrcp.f32 %v1370_v1  ;;  %v1993_v1 = vld [vmem:[%s747_s28] ss:$0 sm:$0xff]  ;;  %s3395_s28 = sand.u32 1, %s2561_s17  }
 0x955   : > { %s1693_s25 = scalar_lea.sflag [#allocation4], %s3395_s28 }
 0x95e   : > { %v2302_v2 = vpop.eup %2301 }
 0x95f   : > { %v1372_v3 = vmul.f32 %v2302_v2, %v2300_v57 }
 0x961   : > { %v1373_v5 = vpack.c.bf16 %v1372_v3, %v1372_v3  ;;  %v1994_v3 = vld [vmem:[%s750_s9] ss:$0 sm:$0xff]  ;;  %s2605_s9 = smov [#allocation10]  }
 0x962   : > { %s2459_s7 = sshll.u32 %s2605_s9, 4  ;;  %s2460_s7 = int_to_ptr.vmem [resolvable:$false] %s2459_s7 }
 0x963   : > { %2109 = vmatmul.mubr.msk.bf16.vlgmr.msra.gmra.mrb[24].mxu1 %vm838_vm3, %v1373_v5  ;;  %s2461_s13 = scalar_lea.vmem %s2460_s7, 256  ;;  %p2462_p4 = scmp.lt.s32.totalorder %s3224_s12, %s2460_s7 }
 0x964   : > { %2122 = vmatprep.mubr.msk.bf16.mxu1 %vm2593_vm1, %v2592_v4  ;;  %2119 = vmatpush3.bf16.msra.mxu1 %v2281_v27  ;;  %p2463_p12 = scmp.lt.s32.totalorder %s2461_s13, %s2455_s20 }
 0x965   : > { %2120 = vmatprep.subr.bf16.mxu1 %v2592_v4 }
 0x966   : > { %p2464_p0 = por %p2463_p12, %p2462_p4 }
 0x968   : > { %2121 = vmatpush3.bf16.msra.mxu1 %v2282_v28  ;;  %p2465_p3 = pnand %p2464_p0, %p2458_p9 }
 0xa36   : > { %v1416_v7 = vpop.f32.mrb[24].mxu1 }
 0xa37   : > { %v1422_v8 = vpack.c.bf16 %v1416_v7, %v1416_v7  ;;  %v2110_v9 = vpop.f32.mrb[25].mxu1 }
 0xa38   : > { %v1419_v10 = vpop.f32.mrb[26].mxu1 }
 0xa39   : > { %v2111_v11 = vpop.f32.mrb[27].mxu1  ;;  %2115 = vmatmul.mubr.msk.bf16.vlgmr.msra.gmra.mrb[20].mxu0 %vm838_vm3, %v1422_v8 }
 0xa3a   : > { %2134 = vmatprep.mubr.msk.bf16.mxu0 %vm2593_vm1, %v2592_v4 }
 0xb0c   : > { %v1463_v12 = vpop.f32.mrb[20].mxu0 }
 0xb0d   : > { %v1469_v15 = vadd.f32 %v1463_v12, %v1310_v61  ;;  %v2116_v16 = vpop.f32.mrb[21].mxu0 }
 0xb0e   : > { %v1466_v17 = vpop.f32.mrb[22].mxu0 }
 0xb0f   : > { %v1477_v18 = vadd.f32 %v1980_v14, %v1469_v15  ;;  %v2117_v19 = vpop.f32.mrb[23].mxu0 }
 0xb11   : > { %v1478_v20 = vadd.f32 %v1477_v18, %v3070_v6  ;;  %v2283_v6 = vld [vmem:[%s3048_s27] sm:$0xff]  }
 0xb12   : > { %2127 = vmatpush3.bf16.msra.mxu0 %v2283_v6 }
 0xb13   : > { %v1479_v21 = vsel %vm786_vm2, %v1478_v20, 0.0  ;;  %2128 = vmatprep.subr.bf16.mxu0 %v2592_v4 }
 0xb14   : > { %1480 = vadd.xlane.f32.xlu1 %v1479_v21 }
 0xb16   : > { %2129 = vmatpush3.bf16.msra.mxu0 %v2284_v29 }
 0xb17   : > { %2130 = vmatprep.subr.bf16.mxu0 %v2592_v4 }
 0xb1a   : > { %2131 = vmatpush3.bf16.msra.mxu0 %v2285_v40 }
 0xb1b   : > { %2132 = vmatprep.subr.bf16.mxu0 %v2592_v4 }
 0xb1e   : > { %2133 = vmatpush3.bf16.msra.mxu0 %v2286_v41 }
 0xba1   : > { %v1481_v22 = vpop.xlane.xlu1 %1480 }
 0xba2   : > { %v1483_v23 = vmul.f32 0.03125, %v1481_v22 }
 0xba4   : > { %v1484_v24 = vsub.f32 %v1478_v20, %v1483_v23 }
 0xba6   : > { %v1485_v25 = vmul.f32 %v1484_v24, %v1484_v24 }
 0xba8   : > { %v1486_v26 = vsel %vm786_vm2, %v1485_v25, 0.0 }
 0xba9   : > { %1487 = vadd.xlane.f32.xlu1 %v1486_v26 }
 0xc36   : > { %v1488_v30 = vpop.xlane.xlu1 %1487 }
 0xc37   : > { %v1489_v31 = vmul.f32 0.03125, %v1488_v30 }
 0xc39   : > { %v1490_v32 = vadd.f32 1e-05, %v1489_v31 }
 0xc3b   : > { %2303 = vrsqrt.f32 %v1490_v32 }
 0xc45   : > { %v2304_v33 = vpop.eup %2303 }
 0xc46   : > { %v1492_v35 = vmul.f32 %v2304_v33, %v1484_v24 }
 0xc48   : > { %v1500_v37 = vmul.f32 %v1981_v34, %v1492_v35 }
 0xc4a   : > { %v1508_v38 = vadd.f32 %v1982_v36, %v1500_v37 }
 0xc4c   : > { %v1509_v39 = vpack.c.bf16 %v1508_v38, %v1508_v38 }
 0xc4e   : > { %2123 = vmatmul.mubr.msk.bf16.vlgmr.msra.gmra.mrb[28].mxu1 %vm786_vm2, %v1509_v39 }
 0xd21   : > { %v1570_v43 = vpop.f32.mrb[28].mxu1 }
 0xd22   : > { %v1571_v44 = vadd.f32 %v1983_v42, %v1570_v43  ;;  %v2124_v45 = vpop.f32.mrb[29].mxu1 }
 0xd23   : > { %v1573_v46 = vpop.f32.mrb[30].mxu1 }
 0xd24   : > { %v1576_v47 = vmax.f32 %v1571_v44, 0.0  ;;  %v2125_v48 = vpop.f32.mrb[31].mxu1 }
 0xd26   : > { %v1577_v49 = vpack.c.bf16 %v1576_v47, %v1576_v47 }
 0xd28   : > { %2135 = vmatmul.mubr.msk.bf16.vlgmr.msra.gmra.mrb[24].mxu0 %vm1617_vm5, %v1577_v49 }
 0xdfb   : > { %v1655_v51 = vpop.f32.mrb[24].mxu0 }
 0xdfc   : > { %v1656_v4 = vadd.f32 %v1987_v50, %v1655_v51  ;;  %v2136_v52 = vpop.f32.mrb[25].mxu0 }
 0xdfd   : > { %v1658_v53 = vpop.f32.mrb[26].mxu0 }
 0xdfe   : > { %v2137_v54 = vpop.f32.mrb[27].mxu0  ;;  %v1661_v55 = vadd.f32 %v1656_v4, %v1508_v38 }
 0xe00   : > { %v1662_v56 = vsel %vm786_vm2, %v1661_v55, 0.0 }
 0xe01   : > { %1663 = vadd.xlane.f32.xlu1 %v1662_v56 }
 0xe8e   : > { %v1664_v57 = vpop.xlane.xlu1 %1663 }
 0xe8f   : > { %v1665_v58 = vmul.f32 0.03125, %v1664_v57 }
 0xe91   : > { %v1666_v59 = vsub.f32 %v1661_v55, %v1665_v58 }
 0xe93   : > { %v1667_v60 = vmul.f32 %v1666_v59, %v1666_v59 }
 0xe95   : > { %v1668_v13 = vsel %vm786_vm2, %v1667_v60, 0.0 }
 0xe96   : > { %1669 = vadd.xlane.f32.xlu1 %v1668_v13 }
 0xf23   : > { %v1670_v61 = vpop.xlane.xlu1 %1669 }
 0xf24   : > { %v1671_v62 = vmul.f32 0.03125, %v1670_v61 }
 0xf26   : > { %v1672_v63 = vadd.f32 1e-05, %v1671_v62 }
 0xf28   : > { %2305 = vrsqrt.f32 %v1672_v63 }
 0xf32   : > { %v2306_v0 = vpop.eup %2305 }
 0xf33   : > { %v1674_v2 = vmul.f32 %v2306_v0, %v1666_v59 }
 0xf35   : > { %v1682_v5 = vmul.f32 %v1993_v1, %v1674_v2 }
 0xf37   : > { %v1690_v7 = vadd.f32 %v1994_v3, %v1682_v5 }
 0xf39   : > { %1691 = vst.msk [vmem:[%s3061_s6] sm:$0xff] %vm786_vm2, %v1690_v7 }
 0xf3a   : > { %2468 = shalt.err (!%p2465_p3)
}
 0xf3b   : > { %s2469_s6 = scalar_lea.hbm %s3222_s0, 128  ;;  %s2473_s4 = scalar_lea.hbm %s3394_s5, 256 }
 0xf3c   : > { %p2470_p5 = scmp.ne.s32.totalorder %s3222_s0, %s2469_s6  ;;  %p2474_p8 = scmp.lt.u32.totalorder %s3222_s0, %s3394_s5 }
 0xf3d   : > { %p2475_p11 = scmp.lt.u32.totalorder %s2473_s4, %s2469_s6  ;;  %p2477_p1 = scmp.lt.u32.totalorder %s2469_s6, %s3222_s0 }
 0xf3e   : > { %p2471_p13 = pnand %p2470_p5, %p3396_p10 }
 0xf3f   : > { %p2476_p6 = por %p2475_p11, %p2474_p8 }
 0xf40   : > { %p2472_p2 = pneg %p2471_p13 }
 0xf41   : > { %p2478_p7 = por %p2477_p1, %p2476_p6 }
 0xf43   : > { %p2479_p9 = pnand %p2478_p7, %p2472_p2 }
 0xf45   : > { %2482 = shalt.err (!%p2479_p9)
}
 0xf46   : > { %2150 = dma.vmem_to_hbm [thread:$0]  (%p3396_p10), %s3224_s12, 128, %s3222_s0, %s1693_s25  }
 0xf47 PF: > { %s3397_s18 = sld [smem:[#allocation22_spill]]  ;;  %s3398_s1 = sld [smem:[#allocation17_spill]] }
 0xf48   : > { %s3399_s2 = sld [smem:[#allocation27_spill]] }
 0xf4d   : > { %p2176_p4 = scmp.ge.s32.totalorder %s3397_s18, 2  ;;  %s1718_s11 = sand.u32 1, %s3398_s1  }
 0xf4e   : > { %p3400_p12 = scmp.ne.s32.totalorder %s3399_s2, 0  ;;  %s1719_s10 = scalar_lea.sflag [#allocation4], %s1718_s11 }
 0xf50   : > { %p2170_p0 = pnand %p2176_p4, %p3400_p12 }
 0xf52   : > { %2540 = dma.done.wait (!%p2170_p0), %s1719_s10, 128  }
 0xf53   : > { %2542 = vsyncadd (!%p2170_p0), %s1719_s10, 4294967168  ;;  %s31_s23 = sadd.s32 1, %s3397_s18   ;;  %s3401_s29 = sld [smem:[#allocation15_spill]] }
 0xf54   : > { %p28_p3 = scmp.ge.s32.totalorder %s31_s23, 6   ;;  %s3402_s30 = sld [smem:[#allocation16_spill]] }
 0xf55   : > { %s3403_s15 = sld [smem:[#allocation25_spill]]  ;;  %s3404_s14 = sld [smem:[#allocation18_spill]] }
 0xf56   : > { %s3405_s18 = sld [smem:[#allocation26_spill]]  ;;  %s3406_s19 = sld [smem:[#allocation20_spill]] }
 0xf57   : > { %s3407_s20 = sld [smem:[#allocation21_spill]]  ;;  %s3408_s21 = sld [smem:[#allocation23_spill]] }
 0xf58   : > { %s3409_s22 = sld [smem:[#allocation24_spill]]  ;;  %s3410_s16 = smov %s2561_s17 }
 0xf59   :  { %30 = sbr.rel (!%p28_p3) target bundleno = 25 (0x19), region = 189 }
 0xf5b   : > { %s3411_s17 = smov %s3404_s14 }
 0xf60   :  { %1724 = vsyncpa [#allocation3], 1 }
 0xf61   :  { %1726 = vsyncpa [#allocation3 + $0x1], 1 }
 0xf62   :  { %1727 = vsyncpa [#allocation6], 1 }
 0xf63   :  { %1728 = vsyncpa [#allocation4], 1 }
 0xf64   :  { %1730 = vsyncpa [#allocation4 + $0x1], 1 }

</bundles_post_ra>
